<compile_context>
chip_gen: v7x
topology: tpu7x:2x2x1
jax: 0.10.0
libtpu: 0.0.40
codegen_flags: <defaults>
</compile_context>

<pallas_src>
import functools

import jax
import jax.numpy as jnp
from jax.experimental import pallas as pl
from jax.experimental.pallas import tpu as pltpu


def _round_up(n, m):
    return ((n + m - 1) // m) * m


# ----------------------------------------------------------------------------
# Fully fused encoder + reparametrisation + decoder kernel.
# One grid step == one latent channel i; decodes z_i through every decoder j.
# ----------------------------------------------------------------------------
def _fused_vae_kernel(x_ref, eps_ref, ew1_ref, eb1_ref, ew2_ref, eb2_ref,
                      dw1_ref, db1_ref, dw2_ref, db2_ref,
                      enc_ref, rec_ref, *, lat_pad, n_dec):
    # ---- encode: merged first layer, block-diagonal [mu | logvar] head ----
    x = x_ref[0]                                                 # (Np, D_IN) bf16
    h = jnp.dot(x, ew1_ref[0], preferred_element_type=jnp.float32) + eb1_ref[0]
    h = jnp.maximum(h, 0.0).astype(jnp.bfloat16)                 # (Np, HID_PAD)
    ml = jnp.dot(h, ew2_ref[0], preferred_element_type=jnp.float32) + eb2_ref[0]
    mu = ml[:, :lat_pad]                                         # (Np, LAT_PAD)
    lv = ml[:, lat_pad:]
    scale = jnp.exp(0.5 * lv)                                    # EUP slot
    z = mu + scale * eps_ref[0]                                  # reparam trick
    # Lane-dense packed slab [mu | logvar | scale | z] == 4*LAT_PAD == 128 lanes.
    enc_ref[0] = jnp.concatenate([ml, scale, z], axis=-1)

    # ---- decode latent channel i through every decoder j (static unroll) ----
    zb = z.astype(jnp.bfloat16)
    for j in range(n_dec):
        hj = jnp.dot(zb, dw1_ref[j], preferred_element_type=jnp.float32) + db1_ref[j]
        hj = jnp.maximum(hj, 0.0).astype(jnp.bfloat16)
        rec_ref[0, j] = (jnp.dot(hj, dw2_ref[j],
                                 preferred_element_type=jnp.float32) + db2_ref[j])


@functools.partial(jax.jit, static_argnames=("lat_pad",))
def fused_forward(x, eps, ew1, eb1, ew2, eb2, dw1, db1, dw2, db2, *, lat_pad):
    """x: (C, Np, D_IN) bf16, eps: (C, Np, LAT_PAD) f32, weights stacked on C.

    Returns:
      packed: (C, Np, 4*LAT_PAD) f32 slab [mu | logvar | scale | z]
      rec:    (C, C, Np, D_OUT) f32 reconstruction means (i = latent ch, j = decoder)
    """
    C, Np, d_in = x.shape
    hid_pad = ew1.shape[-1]
    lat2 = ew2.shape[-1]          # 2 * lat_pad
    dec_hid = dw1.shape[-1]
    d_out = dw2.shape[-1]

    kernel = functools.partial(_fused_vae_kernel, lat_pad=lat_pad, n_dec=C)
    return pl.pallas_call(
        kernel,
        grid=(C,),
        in_specs=[
            pl.BlockSpec((1, Np, d_in), lambda c: (c, 0, 0)),        # x (bf16)
            pl.BlockSpec((1, Np, lat_pad), lambda c: (c, 0, 0)),     # eps
            pl.BlockSpec((1, d_in, hid_pad), lambda c: (c, 0, 0)),   # enc W1 merged
            pl.BlockSpec((1, 1, hid_pad), lambda c: (c, 0, 0)),      # enc b1
            pl.BlockSpec((1, hid_pad, lat2), lambda c: (c, 0, 0)),   # enc W2 blockdiag
            pl.BlockSpec((1, 1, lat2), lambda c: (c, 0, 0)),         # enc b2
            # Decoder stacks: constant block index -> DMA'd once, stay resident.
            pl.BlockSpec((C, lat_pad, dec_hid), lambda c: (0, 0, 0)),
            pl.BlockSpec((C, 1, dec_hid), lambda c: (0, 0, 0)),
            pl.BlockSpec((C, dec_hid, d_out), lambda c: (0, 0, 0)),
            pl.BlockSpec((C, 1, d_out), lambda c: (0, 0, 0)),
        ],
        out_specs=(
            pl.BlockSpec((1, Np, 4 * lat_pad), lambda c: (c, 0, 0)),
            pl.BlockSpec((1, C, Np, d_out), lambda c: (c, 0, 0, 0)),
        ),
        out_shape=(
            jax.ShapeDtypeStruct((C, Np, 4 * lat_pad), jnp.float32),
            jax.ShapeDtypeStruct((C, C, Np, d_out), jnp.float32),
        ),
        compiler_params=pltpu.CompilerParams(
            dimension_semantics=("parallel",)),
    )(x, eps, ew1, eb1, ew2, eb2, dw1, db1, dw2, db2)


# ----------------------------------------------------------------------------
# JAX port of MultiChannelBase (forward pass only)
# ----------------------------------------------------------------------------
class MultiChannelBaseJAX:
    def __init__(self, lat_dim, n_feats, noise_init_logvar=3.0, key=None):
        # n_feats: dict channel_name -> (in_channels, hidden, img_size)
        self.lat_dim = int(lat_dim)
        self.n_feats = n_feats
        self.n_channels = len(n_feats)
        self.noise_init_logvar = float(noise_init_logvar)
        key = jax.random.PRNGKey(42) if key is None else key

        def normal(k, shape):
            return 0.02 * jax.random.normal(k, shape, dtype=jnp.float32)

        lat = self.lat_dim
        C = self.n_channels
        self.ch_dims = []
        for ch in n_feats:
            c, hid, img = n_feats[ch]
            self.ch_dims.append((c, hid, img, c * img * img))

        # Padded (lane-dense) dims shared by all channels.
        self.lat_pad = _round_up(lat, 32)                 # 4*lat_pad % 128 == 0
        self.d_in_pad = _round_up(max(d[3] for d in self.ch_dims), 128)
        self.hid_pad = _round_up(max(2 * d[1] for d in self.ch_dims), 128)
        self.dec_hid_pad = _round_up(max(d[1] for d in self.ch_dims), 128)

        ew1 = jnp.zeros((C, self.d_in_pad, self.hid_pad), jnp.float32)
        ew2 = jnp.zeros((C, self.hid_pad, 2 * self.lat_pad), jnp.float32)
        dw1 = jnp.zeros((C, self.lat_pad, self.dec_hid_pad), jnp.float32)
        dw2 = jnp.zeros((C, self.dec_hid_pad, self.d_in_pad), jnp.float32)
        self.W_out_logvar, self.out_scale = [], []

        for i, (c, hid, img, d_in) in enumerate(self.ch_dims):
            key, *ks = jax.random.split(key, 7)
            # Encoder surrogates (mu / logvar nets).  First layers merged along
            # the output dim; second layers merged block-diagonally so ONE dot
            # yields [mu | logvar] lane-packed.  Zero padding is inert.
            w1_mu, w2_mu = normal(ks[0], (d_in, hid)), normal(ks[1], (hid, lat))
            w1_lv, w2_lv = normal(ks[2], (d_in, hid)), normal(ks[3], (hid, lat))
            ew1 = ew1.at[i, :d_in, :hid].set(w1_mu)
            ew1 = ew1.at[i, :d_in, hid:2 * hid].set(w1_lv)
            ew2 = ew2.at[i, :hid, :lat].set(w2_mu)
            ew2 = ew2.at[i, hid:2 * hid, self.lat_pad:self.lat_pad + lat].set(w2_lv)

            # Decoder surrogate (reconstruction mean).
            d1, d2 = normal(ks[4], (lat, hid)), normal(ks[5], (hid, d_in))
            dw1 = dw1.at[i, :lat, :hid].set(d1)
            dw2 = dw2.at[i, :hid, :d_in].set(d2)

            # W_out_logvar parameter, filled with noise_init_logvar as in the
            # torch code.  Its std exp(0.5*logvar) is a constant of the
            # parameters -> computed ONCE here, never per forward.
            w_lv = jnp.full((c, img, img), self.noise_init_logvar, jnp.float32)
            self.W_out_logvar.append(w_lv)
            self.out_scale.append(jnp.exp(0.5 * w_lv))

        # bf16 weights (MXU), f32 biases (VPU path stays f32, incl. v5e).
        self.enc_params = (ew1.astype(jnp.bfloat16),
                           jnp.zeros((C, 1, self.hid_pad), jnp.float32),
                           ew2.astype(jnp.bfloat16),
                           jnp.zeros((C, 1, 2 * self.lat_pad), jnp.float32))
        self.dec_params = (dw1.astype(jnp.bfloat16),
                           jnp.zeros((C, 1, self.dec_hid_pad), jnp.float32),
                           dw2.astype(jnp.bfloat16),
                           jnp.zeros((C, 1, self.d_in_pad), jnp.float32))

    # ------------------------------------------------------------------ #
    def forward(self, x, key, training=True):
        n = x[0].shape[0]
        lat, LATP, C = self.lat_dim, self.lat_pad, self.n_channels
        n_pad = _round_up(max(n, 8), 8)          # explicit 8-sublane padding

        # NCHW -> (N, C*H*W) bf16, zero-pad batch and feature dims.
        xs = []
        for i, xi in enumerate(x):
            d_in = self.ch_dims[i][3]
            xi_f = xi.reshape(xi.shape[0], -1).astype(jnp.bfloat16)
            xs.append(jnp.pad(xi_f, ((0, n_pad - n), (0, self.d_in_pad - d_in))))
        X = jnp.stack(xs, 0)                                     # (C, Np, D_IN)

        # eps for the reparametrisation trick (zeros in eval -> z == mu).
        if training:
            key, sub = jax.random.split(key)
            eps = jax.random.normal(sub, (C, n, lat), jnp.float32)
            eps = jnp.pad(eps, ((0, 0), (0, n_pad - n), (0, LATP - lat)))
        else:
            eps = jnp.zeros((C, n_pad, LATP), jnp.float32)

        # ---- single fused pallas_call: encode + sample + full decode grid ----
        packed, rec = fused_forward(X, eps, *self.enc_params, *self.dec_params,
                                    lat_pad=LATP)

        qzx, zx = [], []
        for c in range(C):
            qzx.append({"loc": packed[c, :n, 0:lat],
                        "logvar": packed[c, :n, LATP:LATP + lat],
                        "scale": packed[c, :n, 2 * LATP:2 * LATP + lat]})
            zx.append(packed[c, :n, 3 * LATP:3 * LATP + lat])   # == mu in eval

        pxz = []
        for i in range(C):
            row = []
            for j in range(C):
                cj, _, img, d_in = self.ch_dims[j]
                row.append({"loc": rec[i, j, :n, :d_in].reshape(n, cj, img, img),
                            "scale": self.out_scale[j]})
            pxz.append(row)

        return {"x": x, "qzx": qzx, "zx": zx, "pxz": pxz}


# ----------------------------------------------------------------------------
# Demo
# ----------------------------------------------------------------------------
if __name__ == "__main__":
    key = jax.random.PRNGKey(0)
    k_x0, k_x1, k_fwd = jax.random.split(key, 3)

    lat_dim = 8
    # channel_name -> (in_channels, hidden, img_size)
    n_feats = {"fundus": (4, 32, 16), "cmr": (4, 32, 16)}
    batch = 2

    x = [
        jax.random.normal(k_x0, (batch, 4, 16, 16), jnp.float32),  # 'fundus'
        jax.random.normal(k_x1, (batch, 4, 16, 16), jnp.float32),  # 'cmr'
    ]

    model = MultiChannelBaseJAX(lat_dim=lat_dim, n_feats=n_feats,
                                noise_init_logvar=3.0,
                                key=jax.random.PRNGKey(1234))

    out = model.forward(x, key=k_fwd, training=True)

    # block on everything
    jax.block_until_ready(out["zx"])
    jax.block_until_ready([q["loc"] for q in out["qzx"]])
    jax.block_until_ready([[p["loc"] for p in row] for row in out["pxz"]])

    # light sanity checks
    assert out["zx"][0].shape == (batch, lat_dim)
    assert out["qzx"][0]["scale"].shape == (batch, lat_dim)
    assert out["qzx"][1]["loc"].shape == (batch, lat_dim)
    assert out["pxz"][0][1]["loc"].shape == (batch, 4, 16, 16)
    assert out["pxz"][1][0]["scale"].shape == (4, 16, 16)
    assert bool(jnp.all(jnp.isfinite(out["pxz"][0][0]["loc"])))
    assert bool(jnp.all(jnp.isfinite(out["zx"][0])))
    assert bool(jnp.all(out["qzx"][0]["scale"] > 0))

    print("KERNEL_OK")
</pallas_src>

<mosaic_0001>
module attributes {stable_mosaic.version = 11 : i64} {
  func.func @_fused_vae_kernel(%arg0: i32, %arg1: memref<1x8x1024xbf16, #tpu.memory_space<vmem>>, %arg2: memref<1x8x32xf32, #tpu.memory_space<vmem>>, %arg3: memref<1x1024x128xbf16, #tpu.memory_space<vmem>>, %arg4: memref<1x1x128xf32, #tpu.memory_space<vmem>>, %arg5: memref<1x128x64xbf16, #tpu.memory_space<vmem>>, %arg6: memref<1x1x64xf32, #tpu.memory_space<vmem>>, %arg7: memref<2x32x128xbf16, #tpu.memory_space<vmem>>, %arg8: memref<2x1x128xf32, #tpu.memory_space<vmem>>, %arg9: memref<2x128x1024xbf16, #tpu.memory_space<vmem>>, %arg10: memref<2x1x1024xf32, #tpu.memory_space<vmem>>, %arg11: memref<1x8x128xf32, #tpu.memory_space<vmem>>, %arg12: memref<1x2x8x1024xf32, #tpu.memory_space<vmem>>) attributes {dimension_semantics = [#tpu.dimension_semantics<parallel>], iteration_bounds = array<i64: 2>, scalar_prefetch = 0 : i64, scratch_operands = 0 : i64, tpu.core_type = #tpu.core_type<tc>, window_params = [{transform_indices = @transform_0, window_bounds = array<i64: 1, 8, 1024>}, {transform_indices = @transform_1, window_bounds = array<i64: 1, 8, 32>}, {transform_indices = @transform_2, window_bounds = array<i64: 1, 1024, 128>}, {transform_indices = @transform_3, window_bounds = array<i64: 1, 1, 128>}, {transform_indices = @transform_4, window_bounds = array<i64: 1, 128, 64>}, {transform_indices = @transform_5, window_bounds = array<i64: 1, 1, 64>}, {pipeline_mode = #tpu.pipeline_mode<synchronous>, transform_indices = @transform_6, window_bounds = array<i64: 2, 32, 128>}, {pipeline_mode = #tpu.pipeline_mode<synchronous>, transform_indices = @transform_7, window_bounds = array<i64: 2, 1, 128>}, {pipeline_mode = #tpu.pipeline_mode<synchronous>, transform_indices = @transform_8, window_bounds = array<i64: 2, 128, 1024>}, {pipeline_mode = #tpu.pipeline_mode<synchronous>, transform_indices = @transform_9, window_bounds = array<i64: 2, 1, 1024>}, {transform_indices = @transform_10, window_bounds = array<i64: 1, 8, 128>}, {transform_indices = @transform_11, window_bounds = array<i64: 1, 2, 8, 1024>}]} {
    %c0 = arith.constant 0 : index
    %c0_0 = arith.constant 0 : index
    %c0_1 = arith.constant 0 : index
    %0 = vector.load %arg1[%c0, %c0_0, %c0_1] : memref<1x8x1024xbf16, #tpu.memory_space<vmem>>, vector<1x8x1024xbf16>
    %1 = vector.shape_cast %0 : vector<1x8x1024xbf16> to vector<8x1024xbf16>
    %c0_2 = arith.constant 0 : index
    %c0_3 = arith.constant 0 : index
    %c0_4 = arith.constant 0 : index
    %2 = vector.load %arg3[%c0_2, %c0_3, %c0_4] : memref<1x1024x128xbf16, #tpu.memory_space<vmem>>, vector<1x1024x128xbf16>
    %3 = vector.shape_cast %2 : vector<1x1024x128xbf16> to vector<1024x128xbf16>
    %cst = arith.constant dense<0.000000e+00> : vector<8x128xf32>
    %4 = tpu.matmul %1, %3, %cst {dimension_numbers = #tpu.dot_dimension_numbers<[1], [0], [0], [1], [0, 0, 1, 1], [], []>} : vector<8x1024xbf16>, vector<1024x128xbf16>, vector<8x128xf32> -> vector<8x128xf32>
    %c0_5 = arith.constant 0 : index
    %c0_6 = arith.constant 0 : index
    %c0_7 = arith.constant 0 : index
    %5 = vector.load %arg4[%c0_5, %c0_6, %c0_7] : memref<1x1x128xf32, #tpu.memory_space<vmem>>, vector<1x1x128xf32>
    %6 = vector.shape_cast %5 : vector<1x1x128xf32> to vector<1x128xf32>
    %7 = vector.broadcast %6 : vector<1x128xf32> to vector<8x128xf32>
    %8 = arith.addf %4, %7 : vector<8x128xf32>
    %cst_8 = arith.constant 0.000000e+00 : f32
    %9 = vector.broadcast %cst_8 : f32 to vector<8x128xf32>
    %10 = arith.maximumf %8, %9 : vector<8x128xf32>
    %11 = arith.truncf %10 : vector<8x128xf32> to vector<8x128xbf16>
    %c0_9 = arith.constant 0 : index
    %c0_10 = arith.constant 0 : index
    %c0_11 = arith.constant 0 : index
    %12 = vector.load %arg5[%c0_9, %c0_10, %c0_11] : memref<1x128x64xbf16, #tpu.memory_space<vmem>>, vector<1x128x64xbf16>
    %13 = vector.shape_cast %12 : vector<1x128x64xbf16> to vector<128x64xbf16>
    %cst_12 = arith.constant dense<0.000000e+00> : vector<8x64xf32>
    %14 = tpu.matmul %11, %13, %cst_12 {dimension_numbers = #tpu.dot_dimension_numbers<[1], [0], [0], [1], [0, 0, 1, 1], [], []>} : vector<8x128xbf16>, vector<128x64xbf16>, vector<8x64xf32> -> vector<8x64xf32>
    %c0_13 = arith.constant 0 : index
    %c0_14 = arith.constant 0 : index
    %c0_15 = arith.constant 0 : index
    %15 = vector.load %arg6[%c0_13, %c0_14, %c0_15] : memref<1x1x64xf32, #tpu.memory_space<vmem>>, vector<1x1x64xf32>
    %16 = vector.shape_cast %15 : vector<1x1x64xf32> to vector<1x64xf32>
    %17 = vector.broadcast %16 : vector<1x64xf32> to vector<8x64xf32>
    %18 = arith.addf %14, %17 : vector<8x64xf32>
    %19 = vector.extract_strided_slice %18 {offsets = [0, 0], sizes = [8, 32], strides = [1, 1]} : vector<8x64xf32> to vector<8x32xf32>
    %20 = vector.extract_strided_slice %18 {offsets = [0, 32], sizes = [8, 32], strides = [1, 1]} : vector<8x64xf32> to vector<8x32xf32>
    %cst_16 = arith.constant 5.000000e-01 : f32
    %21 = vector.broadcast %cst_16 : f32 to vector<8x32xf32>
    %22 = arith.mulf %21, %20 : vector<8x32xf32>
    %23 = math.exp %22 : vector<8x32xf32>
    %c0_17 = arith.constant 0 : index
    %c0_18 = arith.constant 0 : index
    %c0_19 = arith.constant 0 : index
    %24 = vector.load %arg2[%c0_17, %c0_18, %c0_19] : memref<1x8x32xf32, #tpu.memory_space<vmem>>, vector<1x8x32xf32>
    %25 = vector.shape_cast %24 : vector<1x8x32xf32> to vector<8x32xf32>
    %26 = arith.mulf %23, %25 : vector<8x32xf32>
    %27 = arith.addf %19, %26 : vector<8x32xf32>
    %28 = tpu.concatenate %18, %23, %27 in 1 : vector<8x64xf32>, vector<8x32xf32>, vector<8x32xf32> -> vector<8x128xf32>
    %c0_20 = arith.constant 0 : index
    %c0_21 = arith.constant 0 : index
    %c0_22 = arith.constant 0 : index
    %29 = vector.load %arg11[%c0_20, %c0_21, %c0_22] : memref<1x8x128xf32, #tpu.memory_space<vmem>>, vector<1x8x128xf32>
    %30 = vector.shape_cast %29 : vector<1x8x128xf32> to vector<8x128xf32>
    %31 = vector.shape_cast %28 : vector<8x128xf32> to vector<1x8x128xf32>
    tpu.vector_store %arg11[%c0_20, %c0_21, %c0_22], %31 {strides = array<i32>} : memref<1x8x128xf32, #tpu.memory_space<vmem>>, vector<1x8x128xf32>,
    %32 = arith.truncf %27 : vector<8x32xf32> to vector<8x32xbf16>
    %c0_23 = arith.constant 0 : index
    %c0_24 = arith.constant 0 : index
    %c0_25 = arith.constant 0 : index
    %33 = vector.load %arg7[%c0_23, %c0_24, %c0_25] : memref<2x32x128xbf16, #tpu.memory_space<vmem>>, vector<1x32x128xbf16>
    %34 = vector.shape_cast %33 : vector<1x32x128xbf16> to vector<32x128xbf16>
    %cst_26 = arith.constant dense<0.000000e+00> : vector<8x128xf32>
    %35 = tpu.matmul %32, %34, %cst_26 {dimension_numbers = #tpu.dot_dimension_numbers<[1], [0], [0], [1], [0, 0, 1, 1], [], []>} : vector<8x32xbf16>, vector<32x128xbf16>, vector<8x128xf32> -> vector<8x128xf32>
    %c0_27 = arith.constant 0 : index
    %c0_28 = arith.constant 0 : index
    %c0_29 = arith.constant 0 : index
    %36 = vector.load %arg8[%c0_27, %c0_28, %c0_29] : memref<2x1x128xf32, #tpu.memory_space<vmem>>, vector<1x1x128xf32>
    %37 = vector.shape_cast %36 : vector<1x1x128xf32> to vector<1x128xf32>
    %38 = vector.broadcast %37 : vector<1x128xf32> to vector<8x128xf32>
    %39 = arith.addf %35, %38 : vector<8x128xf32>
    %cst_30 = arith.constant 0.000000e+00 : f32
    %40 = vector.broadcast %cst_30 : f32 to vector<8x128xf32>
    %41 = arith.maximumf %39, %40 : vector<8x128xf32>
    %42 = arith.truncf %41 : vector<8x128xf32> to vector<8x128xbf16>
    %c0_31 = arith.constant 0 : index
    %c0_32 = arith.constant 0 : index
    %c0_33 = arith.constant 0 : index
    %43 = vector.load %arg9[%c0_31, %c0_32, %c0_33] : memref<2x128x1024xbf16, #tpu.memory_space<vmem>>, vector<1x128x1024xbf16>
    %44 = vector.shape_cast %43 : vector<1x128x1024xbf16> to vector<128x1024xbf16>
    %cst_34 = arith.constant dense<0.000000e+00> : vector<8x1024xf32>
    %45 = tpu.matmul %42, %44, %cst_34 {dimension_numbers = #tpu.dot_dimension_numbers<[1], [0], [0], [1], [0, 0, 1, 1], [], []>} : vector<8x128xbf16>, vector<128x1024xbf16>, vector<8x1024xf32> -> vector<8x1024xf32>
    %c0_35 = arith.constant 0 : index
    %c0_36 = arith.constant 0 : index
    %c0_37 = arith.constant 0 : index
    %46 = vector.load %arg10[%c0_35, %c0_36, %c0_37] : memref<2x1x1024xf32, #tpu.memory_space<vmem>>, vector<1x1x1024xf32>
    %47 = vector.shape_cast %46 : vector<1x1x1024xf32> to vector<1x1024xf32>
    %48 = vector.broadcast %47 : vector<1x1024xf32> to vector<8x1024xf32>
    %49 = arith.addf %45, %48 : vector<8x1024xf32>
    %c0_38 = arith.constant 0 : index
    %c0_39 = arith.constant 0 : index
    %c0_40 = arith.constant 0 : index
    %c0_41 = arith.constant 0 : index
    %50 = vector.load %arg12[%c0_38, %c0_39, %c0_40, %c0_41] : memref<1x2x8x1024xf32, #tpu.memory_space<vmem>>, vector<1x1x8x1024xf32>
    %51 = vector.shape_cast %50 : vector<1x1x8x1024xf32> to vector<8x1024xf32>
    %52 = vector.shape_cast %49 : vector<8x1024xf32> to vector<1x1x8x1024xf32>
    tpu.vector_store %arg12[%c0_38, %c0_39, %c0_40, %c0_41], %52 {strides = array<i32>} : memref<1x2x8x1024xf32, #tpu.memory_space<vmem>>, vector<1x1x8x1024xf32>,
    %c1 = arith.constant 1 : index
    %c0_42 = arith.constant 0 : index
    %c0_43 = arith.constant 0 : index
    %53 = vector.load %arg7[%c1, %c0_42, %c0_43] : memref<2x32x128xbf16, #tpu.memory_space<vmem>>, vector<1x32x128xbf16>
    %54 = vector.shape_cast %53 : vector<1x32x128xbf16> to vector<32x128xbf16>
    %cst_44 = arith.constant dense<0.000000e+00> : vector<8x128xf32>
    %55 = tpu.matmul %32, %54, %cst_44 {dimension_numbers = #tpu.dot_dimension_numbers<[1], [0], [0], [1], [0, 0, 1, 1], [], []>} : vector<8x32xbf16>, vector<32x128xbf16>, vector<8x128xf32> -> vector<8x128xf32>
    %c1_45 = arith.constant 1 : index
    %c0_46 = arith.constant 0 : index
    %c0_47 = arith.constant 0 : index
    %56 = vector.load %arg8[%c1_45, %c0_46, %c0_47] : memref<2x1x128xf32, #tpu.memory_space<vmem>>, vector<1x1x128xf32>
    %57 = vector.shape_cast %56 : vector<1x1x128xf32> to vector<1x128xf32>
    %58 = vector.broadcast %57 : vector<1x128xf32> to vector<8x128xf32>
    %59 = arith.addf %55, %58 : vector<8x128xf32>
    %cst_48 = arith.constant 0.000000e+00 : f32
    %60 = vector.broadcast %cst_48 : f32 to vector<8x128xf32>
    %61 = arith.maximumf %59, %60 : vector<8x128xf32>
    %62 = arith.truncf %61 : vector<8x128xf32> to vector<8x128xbf16>
    %c1_49 = arith.constant 1 : index
    %c0_50 = arith.constant 0 : index
    %c0_51 = arith.constant 0 : index
    %63 = vector.load %arg9[%c1_49, %c0_50, %c0_51] : memref<2x128x1024xbf16, #tpu.memory_space<vmem>>, vector<1x128x1024xbf16>
    %64 = vector.shape_cast %63 : vector<1x128x1024xbf16> to vector<128x1024xbf16>
    %cst_52 = arith.constant dense<0.000000e+00> : vector<8x1024xf32>
    %65 = tpu.matmul %62, %64, %cst_52 {dimension_numbers = #tpu.dot_dimension_numbers<[1], [0], [0], [1], [0, 0, 1, 1], [], []>} : vector<8x128xbf16>, vector<128x1024xbf16>, vector<8x1024xf32> -> vector<8x1024xf32>
    %c1_53 = arith.constant 1 : index
    %c0_54 = arith.constant 0 : index
    %c0_55 = arith.constant 0 : index
    %66 = vector.load %arg10[%c1_53, %c0_54, %c0_55] : memref<2x1x1024xf32, #tpu.memory_space<vmem>>, vector<1x1x1024xf32>
    %67 = vector.shape_cast %66 : vector<1x1x1024xf32> to vector<1x1024xf32>
    %68 = vector.broadcast %67 : vector<1x1024xf32> to vector<8x1024xf32>
    %69 = arith.addf %65, %68 : vector<8x1024xf32>
    %c0_56 = arith.constant 0 : index
    %c1_57 = arith.constant 1 : index
    %c0_58 = arith.constant 0 : index
    %c0_59 = arith.constant 0 : index
    %70 = vector.load %arg12[%c0_56, %c1_57, %c0_58, %c0_59] : memref<1x2x8x1024xf32, #tpu.memory_space<vmem>>, vector<1x1x8x1024xf32>
    %71 = vector.shape_cast %70 : vector<1x1x8x1024xf32> to vector<8x1024xf32>
    %72 = vector.shape_cast %69 : vector<8x1024xf32> to vector<1x1x8x1024xf32>
    tpu.vector_store %arg12[%c0_56, %c1_57, %c0_58, %c0_59], %72 {strides = array<i32>} : memref<1x2x8x1024xf32, #tpu.memory_space<vmem>>, vector<1x1x8x1024xf32>,
    return
  }
  func.func @transform_0(%arg0: i32) -> (i32, i32, i32) {
    %c0_i32 = arith.constant 0 : i32
    %c0_i32_0 = arith.constant 0 : i32
    %c0_i32_1 = arith.constant 0 : i32
    return %arg0, %c0_i32, %c0_i32_0 : i32, i32, i32
  }
  func.func @transform_1(%arg0: i32) -> (i32, i32, i32) {
    %c0_i32 = arith.constant 0 : i32
    %c0_i32_0 = arith.constant 0 : i32
    %c0_i32_1 = arith.constant 0 : i32
    return %arg0, %c0_i32, %c0_i32_0 : i32, i32, i32
  }
  func.func @transform_2(%arg0: i32) -> (i32, i32, i32) {
    %c0_i32 = arith.constant 0 : i32
    %c0_i32_0 = arith.constant 0 : i32
    %c0_i32_1 = arith.constant 0 : i32
    return %arg0, %c0_i32, %c0_i32_0 : i32, i32, i32
  }
  func.func @transform_3(%arg0: i32) -> (i32, i32, i32) {
    %c0_i32 = arith.constant 0 : i32
    %c0_i32_0 = arith.constant 0 : i32
    %c0_i32_1 = arith.constant 0 : i32
    return %arg0, %c0_i32, %c0_i32_0 : i32, i32, i32
  }
  func.func @transform_4(%arg0: i32) -> (i32, i32, i32) {
    %c0_i32 = arith.constant 0 : i32
    %c0_i32_0 = arith.constant 0 : i32
    %c0_i32_1 = arith.constant 0 : i32
    return %arg0, %c0_i32, %c0_i32_0 : i32, i32, i32
  }
  func.func @transform_5(%arg0: i32) -> (i32, i32, i32) {
    %c0_i32 = arith.constant 0 : i32
    %c0_i32_0 = arith.constant 0 : i32
    %c0_i32_1 = arith.constant 0 : i32
    return %arg0, %c0_i32, %c0_i32_0 : i32, i32, i32
  }
  func.func @transform_6(%arg0: i32) -> (i32, i32, i32) {
    %c0_i32 = arith.constant 0 : i32
    %c0_i32_0 = arith.constant 0 : i32
    %c0_i32_1 = arith.constant 0 : i32
    %c0_i32_2 = arith.constant 0 : i32
    return %c0_i32, %c0_i32_0, %c0_i32_1 : i32, i32, i32
  }
  func.func @transform_7(%arg0: i32) -> (i32, i32, i32) {
    %c0_i32 = arith.constant 0 : i32
    %c0_i32_0 = arith.constant 0 : i32
    %c0_i32_1 = arith.constant 0 : i32
    %c0_i32_2 = arith.constant 0 : i32
    return %c0_i32, %c0_i32_0, %c0_i32_1 : i32, i32, i32
  }
  func.func @transform_8(%arg0: i32) -> (i32, i32, i32) {
    %c0_i32 = arith.constant 0 : i32
    %c0_i32_0 = arith.constant 0 : i32
    %c0_i32_1 = arith.constant 0 : i32
    %c0_i32_2 = arith.constant 0 : i32
    return %c0_i32, %c0_i32_0, %c0_i32_1 : i32, i32, i32
  }
  func.func @transform_9(%arg0: i32) -> (i32, i32, i32) {
    %c0_i32 = arith.constant 0 : i32
    %c0_i32_0 = arith.constant 0 : i32
    %c0_i32_1 = arith.constant 0 : i32
    %c0_i32_2 = arith.constant 0 : i32
    return %c0_i32, %c0_i32_0, %c0_i32_1 : i32, i32, i32
  }
  func.func @transform_10(%arg0: i32) -> (i32, i32, i32) {
    %c0_i32 = arith.constant 0 : i32
    %c0_i32_0 = arith.constant 0 : i32
    %c0_i32_1 = arith.constant 0 : i32
    return %arg0, %c0_i32, %c0_i32_0 : i32, i32, i32
  }
  func.func @transform_11(%arg0: i32) -> (i32, i32, i32, i32) {
    %c0_i32 = arith.constant 0 : i32
    %c0_i32_0 = arith.constant 0 : i32
    %c0_i32_1 = arith.constant 0 : i32
    %c0_i32_2 = arith.constant 0 : i32
    return %arg0, %c0_i32, %c0_i32_0, %c0_i32_1 : i32, i32, i32, i32
  }
}

</mosaic_0001>

<bundles_post_ra>
// kernel: fused_forward.1
= control target key start
LH: loop header
LB: loop body
LE: loop exit
PB: predicated region body
PF: predicated region fallthrough
CT: control target
= control target key end

     0   :  { %s4197_s0 = inlined_call_operand.vmem [shape: bf16[2,8,1024], index: 0, kind: input, shape index: {}]   ;;  %s4198_s1 = inlined_call_operand.vmem [shape: f32[2,8,32], index: 1, kind: input, shape index: {}]   ;;  %s4199_s2 = inlined_call_operand.hbm [shape: bf16[2,1024,128], index: 2, kind: input, shape index: {}]   ;;  %s4200_s3 = inlined_call_operand.vmem [shape: f32[2,1,128], index: 3, kind: input, shape index: {}]   ;;  %s4201_s4 = inlined_call_operand.vmem [shape: bf16[2,128,64], index: 4, kind: input, shape index: {}]   ;;  %s4202_s5 = inlined_call_operand.vmem [shape: f32[2,1,64], index: 5, kind: input, shape index: {}]   ;;  %s4203_s6 = inlined_call_operand.vmem [shape: bf16[2,32,128], index: 6, kind: input, shape index: {}]   ;;  %s4204_s7 = inlined_call_operand.vmem [shape: f32[2,1,128], index: 7, kind: input, shape index: {}]   ;;  %s4205_s8 = inlined_call_operand.hbm [shape: bf16[2,128,1024], index: 8, kind: input, shape index: {}]   ;;  %s4206_s9 = inlined_call_operand.vmem [shape: f32[2,1,1024], index: 9, kind: input, shape index: {}]   ;;  %s4207_s10 = inlined_call_operand.hbm [shape: f32[2,8,128], index: 10, kind: output, shape index: {0}]   ;;  %s4208_s11 = inlined_call_operand.hbm [shape: f32[2,2,8,1024], index: 11, kind: output, shape index: {1}]  }
   0x1   :  { %4217 = sst [smem:[#allocation17_spill]] %s4208_s11 }
   0x2   :  { %17 = vsyncpa [#allocation3], 0 }
   0x3   :  { %19 = vsyncpa [#allocation3 + $0x1], 0 }
   0x4   :  { %20 = vsyncpa [#allocation6], 0 }
   0x5   :  { %21 = vsyncpa [#allocation4], 0 }
   0x6   :  { %23 = vsyncpa [#allocation4 + $0x1], 0 }
   0x7   :  { %24 = vsyncpa [#allocation9], 0 }
   0x8   :  { %26 = vsyncpa [#allocation9 + $0x1], 0  ;;  %s3700_s17 = smov 0   ;;  %s3702_s18 = smov 0  }
   0x9   :  { %s3704_s19 = smov 0   ;;  %s3706_s20 = smov 0  }
   0xa LB: > { %4218 = sst [smem:[#allocation14_spill]] %s3611_s17  ;;  %s3721_s21 = sadd.s32 4294967295, %s3623_s20   ;;  %s3623_s20 = sphi %s3706_s20, %s4237_s20   ;;  %s3619_s19 = sphi %s3704_s19, %s4240_s19   ;;  %s3615_s18 = sphi %s3702_s18, %s4239_s18   ;;  %s3611_s17 = sphi %s3700_s17, %s4238_s17  }
   0xb   : > { %s2905_s22 = sadd.s32 4294967294, %s3623_s20   ;;  %p104_p0 = scmp.ne.s32.totalorder %s3615_s18, %s3611_s17 }
   0xc   : > { %p4212_p1 = scmp.eq.s32.totalorder %s3721_s21, 0  ;;  %p296_p3 = scmp.eq.s32.totalorder %s2905_s22, 1 }
   0xd   : > { %p2906_p5 = scmp.ge.s32.totalorder %s3623_s20, 1  ;;  %p329_p7 = scmp.lt.s32.totalorder %s3623_s20, 3 }
   0xe   : > { %p3730_p4 = por %p4212_p1, %p104_p0  ;;  %p3735_p6 = por %p296_p3, %p104_p0 }
   0xf   : > { %p3740_p8 = pnand %p2906_p5, %p329_p7  ;;  %s3625_s26 = smov [#allocation5]  }
  0x10   : > { %s4219_s23 = scalar_select %p3730_p4, 1, 0 }
  0x11   : > { %s4220_s24 = scalar_select %p3735_p6, 1, 0 }
  0x12   : > { %s4222_s25 = scalar_select %p3740_p8, 1, 0 }
  0x13   : > { %4221 = sst [smem:[#allocation15_spill]] %s4220_s24  ;;  %s347_s27 = sshll.u32 %s3625_s26, 4  ;;  %s3744_s27 = int_to_ptr.vmem [resolvable:$true] %s347_s27 }
  0x14   : > { %p3314_p9 = pneg %p3740_p8  ;;  %s3756_s29 = sadd.s32 1, %s3623_s20  }
  0x15   : > { %4224 = sst [smem:[#allocation16_spill]] %s3756_s29  ;;  %s91_s30 = sadd.s32 1, %s3619_s19 }
  0x16   : > { %p3751_p11 = pnand %p3314_p9, %p4212_p1  ;;  %s88_s12 = ssub.s32 %s3623_s20, %s3756_s29 }
  0x17   : > { %s3463_s15 = scalar_lea.hbm %s4205_s8, 16384 }
  0x18   : > { %p3464_p12 = scmp.ne.s32.totalorder %s4205_s8, %s3463_s15  ;;  %p3465_p13 = pneg %p3751_p11 }
  0x19   : > { %p3470_p5 = scmp.lt.u32.totalorder %s3463_s15, %s4205_s8 }
  0x1a   : > { %p3466_p0 = pnand %p3465_p13, %p3464_p12 }
  0x1c   : > { %p3467_p3 = pneg %p3466_p0 }
  0x1e   : > { %p3472_p7 = pnand %p3470_p5, %p3467_p3 }
  0x20   : > { %3475 = shalt.err (!%p3472_p7)
}
  0x21   : > { %s3476_s29 = scalar_lea.vmem %s3744_s27, 16384  ;;  %p3484_p2 = scmp.lt.s32.totalorder %s3744_s27, %s3744_s27 }
  0x22   : > { %p3477_p9 = scmp.ne.s32.totalorder %s3744_s27, %s3476_s29  ;;  %p3485_p6 = scmp.lt.s32.totalorder %s3476_s29, %s3476_s29 }
  0x24   : > { %p3479_p10 = pnand %p3477_p9, %p3465_p13  ;;  %p3486_p4 = por %p3485_p6, %p3484_p2 }
  0x26   : > { %p3480_p1 = pneg %p3479_p10 }
  0x28   : > { %p3487_p8 = pnand %p3486_p4, %p3480_p1 }
  0x2a   : > { %3490 = shalt.err (!%p3487_p8)
}
  0x2b   : > { %s3626_s13 = smov 512   ;;  %s3627_s24 = smov 32  }
  0x2c   : > { %3317 = dma.hbm_to_vmem [thread:$0]  (!%p3751_p11), %s4205_s8, 16384, %s3744_s27, [#allocation6], %s3626_s13, %s3626_s13, %s3627_s24  }
  0x2d   : > { %p89_p2 = scmp.eq.s32.totalorder %s88_s12, 0  ;;  %p98_p1 = scmp.ne.s32.totalorder %s3619_s19, %s3615_s18 }
  0x2e   : > { %p99_p4 = scmp.eq.s32.totalorder %s3623_s20, 0  ;;  %p3330_p6 = scmp.lt.s32.totalorder %s3623_s20, 2 }
  0x2f   : > { %s3787_s29 = scalar_select %p89_p2, %s3619_s19, %s91_s30  }
  0x30   : > { %p100_p8 = por %p99_p4, %p98_p1  ;;  %p4225_p10 = scmp.eq.s32.totalorder %s3721_s21, 1 }
  0x31   : > { %s379_s22 = sand.u32 1, %s3619_s19   ;;  %s3161_s26 = sshll.u32 %s3623_s20, 13 }
  0x32   : > { %p3791_p12 = por %p4225_p10, %p98_p1  ;;  %s2909_s17 = sshll.u32 %s379_s22, 9 }
  0x33   : > { %s3800_s14 = scalar_lea.hbm %s4199_s2, %s3161_s26  ;;  %s383_s27 = scalar_lea.vmem [#allocation2], %s2909_s17 }
  0x34   : > { %s390_s30 = sshll.u32 %s383_s27, 4  ;;  %p3802_p11 = pnand %p3330_p6, %p100_p8  ;;  %s3806_s30 = int_to_ptr.vmem [resolvable:$true] %s390_s30 }
  0x35   : > { %s3808_s13 = scalar_lea.sflag [#allocation3], %s379_s22  ;;  %s3491_s24 = scalar_lea.hbm %s3800_s14, 8192 }
  0x36   : > { %p3492_p13 = scmp.ne.s32.totalorder %s3800_s14, %s3491_s24  ;;  %p3493_p0 = pneg %p3802_p11 }
  0x37   : > { %s3496_s15 = scalar_lea.hbm %s4199_s2, 16384  ;;  %p3497_p7 = scmp.lt.u32.totalorder %s3800_s14, %s4199_s2 }
  0x38   : > { %p3494_p3 = pnand %p3493_p0, %p3492_p13  ;;  %p3498_p9 = scmp.lt.u32.totalorder %s3496_s15, %s3491_s24 }
  0x39   : > { %p3500_p1 = scmp.lt.u32.totalorder %s3491_s24, %s3800_s14 }
  0x3a   : > { %p3495_p5 = pneg %p3494_p3  ;;  %p3499_p2 = por %p3498_p9, %p3497_p7 }
  0x3c   : > { %p3501_p4 = por %p3500_p1, %p3499_p2 }
  0x3e   : > { %p3502_p6 = pnand %p3501_p4, %p3495_p5 }
  0x40   : > { %3505 = shalt.err (!%p3502_p6)
}
  0x41   : > { %s3506_s22 = scalar_lea.vmem %s3806_s30, 8192  ;;  %s3628_s27 = smov [#allocation2]  }
  0x42   : > { %p3507_p8 = scmp.ne.s32.totalorder %s3806_s30, %s3506_s22  ;;  %s3511_s11 = sshll.u32 %s3628_s27, 4  ;;  %s3512_s11 = int_to_ptr.vmem [resolvable:$false] %s3511_s11 }
  0x43   : > { %s3513_s17 = scalar_lea.vmem %s3512_s11, 16384  ;;  %p3514_p3 = scmp.lt.s32.totalorder %s3806_s30, %s3512_s11 }
  0x44   : > { %p3509_p10 = pnand %p3507_p8, %p3493_p0  ;;  %p3515_p7 = scmp.lt.s32.totalorder %s3513_s17, %s3506_s22 }
  0x46   : > { %p3510_p13 = pneg %p3509_p10  ;;  %p3516_p9 = por %p3515_p7, %p3514_p3 }
  0x48   : > { %p3517_p2 = pnand %p3516_p9, %p3510_p13 }
  0x4a   : > { %3520 = shalt.err (!%p3517_p2)
}
  0x4b   : > { %s3629_s24 = smov 64   ;;  %s3630_s15 = smov 4  }
  0x4c   : > { %3321 = dma.hbm_to_vmem [thread:$0]  (!%p3802_p11), %s3800_s14, 8192, %s3806_s30, %s3808_s13, %s3629_s24, %s3629_s24, %s3630_s15  }
  0x4d   : > { %p4228_p0 = scmp.ne.s32.totalorder %s4222_s25, 0 }
  0x4e   : > { %s3839_s26 = sand.u32 (!%p4228_p0), 1, %s3615_s18   ;;  %p4229_p5 = scmp.ne.s32.totalorder (!%p4228_p0), %s4219_s23, 0 }
  0x4f   : > { %422 = sbr.rel (%p4228_p0) target bundleno = 1467 (0x5bb), region = 60  ;;  %s2913_s28 = sshll.u32 (!%p4228_p0), %s3839_s26, 9 }
  0x50   : > { %s425_s22 = scalar_lea.sflag (!%p4228_p0), [#allocation3], %s3839_s26  ;;  %s3843_s27 = scalar_lea.vmem (!%p4228_p0), [#allocation2], %s2913_s28 }
  0x56   : > { %3594 = dma.done.wait (%p4229_p5), %s425_s22, 8192  }
  0x57   : > { %3596 = vsyncadd (%p4229_p5), %s425_s22, 4294959104  ;;  %p4230_p11 = scmp.eq.s32.totalorder %s3721_s21, 0 }
  0x59   : > { %3598 = dma.done.wait (%p4230_p11), [#allocation6], 16384   ;;  %p4231_p1 = pmov %p4230_p11 }
  0x5a   : > { %v3377_v0 = vld [vmem:[%s3843_s27 + $0x40] sm:$0xff]   ;;  %v3381_v4 = vld [vmem:[%s3843_s27 + $0x48] sm:$0xff]   ;;  %v3385_v8 = vld [vmem:[%s3843_s27 + $0x50] sm:$0xff]   ;;  %p496_p4 = scmp.lt.s32.totalorder %s3721_s21, 1  ;;  %vm3632_vm0 = vmmov 0   ;;  %vm1392_vm1 = vcmask 261120  }
  0x5b   : > { %3600 = vsyncadd (%p4231_p1), [#allocation6], 4294950912  ;;  %v3378_v1 = vld [vmem:[%s3843_s27 + $0xc0] sm:$0xff]   ;;  %3165 = vmatprep.subr.bf16.mxu0 %v3377_v0  ;;  %v3382_v5 = vld [vmem:[%s3843_s27 + $0xc8] sm:$0xff]   ;;  %vm1363_vm2 = vcmask 523264   ;;  %vm1365_vm3 = vcmask 785408  }
  0x5c   : > { %v3379_v2 = vld [vmem:[%s3843_s27] sm:$0xff]   ;;  %3187 = vmatprep.subr.bf16.mxu1 %v3378_v1  ;;  %v3383_v6 = vld [vmem:[%s3843_s27 + $0x8] sm:$0xff]   ;;  %v3386_v9 = vld [vmem:[%s3843_s27 + $0xd0] sm:$0xff]   ;;  %s3878_s23 = scalar_select %p496_p4, %s3721_s21, 1 }
  0x5d   : > { %v3380_v3 = vld [vmem:[%s3843_s27 + $0x80] sm:$0xff]   ;;  %3166 = vmatpush3.bf16.msra.mxu0 %v3379_v2  ;;  %v3384_v7 = vld [vmem:[%s3843_s27 + $0x88] sm:$0xff]   ;;  %v3387_v10 = vld [vmem:[%s3843_s27 + $0x10] sm:$0xff]   ;;  %s2916_s28 = sshll.u32 %s3839_s26, 7  ;;  %s3156_s14 = sshll.u32 %s3721_s21, 7 }
  0x5e   : > { %3188 = vmatpush3.bf16.msra.mxu1 %v3380_v3  ;;  %3167 = vmatprep.subr.bf16.mxu0 %v3381_v4  ;;  %v3388_v11 = vld [vmem:[%s3843_s27 + $0x90] sm:$0xff]   ;;  %v3389_v12 = vld [vmem:[%s3843_s27 + $0x58] sm:$0xff]   ;;  %v3393_v16 = vld [vmem:[%s3843_s27 + $0x60] sm:$0xff]   ;;  %s3162_s25 = sshll.u32 %s3878_s23, 5  ;;  %s3163_s13 = sshll.u32 %s3878_s23, 6 }
  0x5f   : > { %3189 = vmatprep.subr.bf16.mxu1 %v3382_v5  ;;  %v3390_v13 = vld [vmem:[%s3843_s27 + $0xd8] sm:$0xff]   ;;  %v3394_v17 = vld [vmem:[%s3843_s27 + $0xe0] sm:$0xff]   ;;  %v3397_v20 = vld [vmem:[%s3843_s27 + $0x68] sm:$0xff]   ;;  %s3891_s12 = scalar_lea.vmem %s4197_s0, %s3162_s25  ;;  %s3932_s24 = scalar_lea.vmem %s4201_s4, %s3163_s13 }
  0x60   : > { %v3391_v14 = vld [vmem:[%s3843_s27 + $0x18] sm:$0xff]   ;;  %v3395_v18 = vld [vmem:[%s3843_s27 + $0x20] sm:$0xff]   ;;  %v3398_v21 = vld [vmem:[%s3843_s27 + $0xe8] sm:$0xff]   ;;  %s2919_s15 = sshll.u32 %s3878_s23, 3  ;;  %s3633_s25 = smov 32  }
  0x61   : > { %3168 = vmatpush3.bf16.msra.mxu0 %v3383_v6  ;;  %v3392_v15 = vld [vmem:[%s3843_s27 + $0x98] sm:$0xff]   ;;  %v3396_v19 = vld [vmem:[%s3843_s27 + $0xa0] sm:$0xff]   ;;  %v3399_v22 = vld [vmem:[%s3843_s27 + $0x28] sm:$0xff]   ;;  %s4055_s22 = scalar_lea.vmem [#allocation8], %s2916_s28  ;;  %s4099_s11 = scalar_lea.hbm %s4207_s10, %s3156_s14 }
  0x62   : > { %3190 = vmatpush3.bf16.msra.mxu1 %v3384_v7  ;;  %3169 = vmatprep.subr.bf16.mxu0 %v3385_v8  ;;  %v3400_v23 = vld [vmem:[%s3843_s27 + $0xa8] sm:$0xff]   ;;  %v3401_v24 = vld [vmem:[%s3843_s27 + $0x70] sm:$0xff]   ;;  %v3405_v28 = vld [vmem:[%s3843_s27 + $0x78] sm:$0xff]   ;;  %s2705_s17 = scalar_lea.sflag [#allocation4], %s3839_s26 }
  0x63   : > { %3191 = vmatprep.subr.bf16.mxu1 %v3386_v9  ;;  %v3402_v25 = vld [vmem:[%s3843_s27 + $0xf0] sm:$0xff]   ;;  %v3406_v29 = vld [vmem:[%s3843_s27 + $0xf8] sm:$0xff]   ;;  %v517_v32 = vld [vmem:[%s3891_s12] sm:$0xff] }
  0x64   : > { %v3403_v26 = vld [vmem:[%s3843_s27 + $0x30] sm:$0xff]   ;;  %v3407_v30 = vld [vmem:[%s3843_s27 + $0x38] sm:$0xff]   ;;  %v518_v33 = vld [vmem:[%s3891_s12 + $0x8] sm:$0xff]  ;;  %v2923_v34 = vcombine.low %v517_v32, %v517_v32  ;;  %v2924_v35 = vcombine.high %v517_v32, %v517_v32 }
  0x65   : > { %3170 = vmatpush3.bf16.msra.mxu0 %v3387_v10  ;;  %v3404_v27 = vld [vmem:[%s3843_s27 + $0xb0] sm:$0xff]   ;;  %v3408_v31 = vld [vmem:[%s3843_s27 + $0xb8] sm:$0xff]   ;;  %v2925_v36 = vcombine.low %v518_v33, %v518_v33  ;;  %v2926_v37 = vcombine.high %v518_v33, %v518_v33  ;;  %v3413_v38 = vld [vmem:[%s3843_s27 + $0x140] sm:$0xff]  }
  0x66   : > { %3192 = vmatpush3.bf16.msra.mxu1 %v3388_v11  ;;  %3171 = vmatprep.subr.bf16.mxu0 %v3389_v12  ;;  %v3414_v39 = vld [vmem:[%s3843_s27 + $0x1c0] sm:$0xff]   ;;  %v3417_v42 = vld [vmem:[%s3843_s27 + $0x148] sm:$0xff]   ;;  %v3421_v46 = vld [vmem:[%s3843_s27 + $0x150] sm:$0xff]  }
  0x67   : > { %3193 = vmatprep.subr.bf16.mxu1 %v3390_v13  ;;  %1100 = vmatprep.mubr.bf16.mxu0 %v2924_v35  ;;  %v3415_v40 = vld [vmem:[%s3843_s27 + $0x100] sm:$0xff]   ;;  %v3418_v43 = vld [vmem:[%s3843_s27 + $0x1c8] sm:$0xff]   ;;  %v3422_v47 = vld [vmem:[%s3843_s27 + $0x1d0] sm:$0xff]   ;;  %v3631_v13 = vmov 0.0  }
  0x68   : > { %1140 = vmatprep.mubr.bf16.mxu1 %v2926_v37  ;;  %v3416_v41 = vld [vmem:[%s3843_s27 + $0x180] sm:$0xff]   ;;  %v3419_v44 = vld [vmem:[%s3843_s27 + $0x108] sm:$0xff]   ;;  %v3423_v48 = vld [vmem:[%s3843_s27 + $0x110] sm:$0xff]  }
  0x69   : > { %3172 = vmatpush3.bf16.msra.mxu0 %v3391_v14  ;;  %v3420_v45 = vld [vmem:[%s3843_s27 + $0x188] sm:$0xff]   ;;  %v3424_v49 = vld [vmem:[%s3843_s27 + $0x190] sm:$0xff]   ;;  %v3425_v50 = vld [vmem:[%s3843_s27 + $0x158] sm:$0xff]  }
  0x6a   : > { %3194 = vmatpush3.bf16.msra.mxu1 %v3392_v15  ;;  %3173 = vmatprep.subr.bf16.mxu0 %v3393_v16  ;;  %v3426_v51 = vld [vmem:[%s3843_s27 + $0x1d8] sm:$0xff]   ;;  %v3429_v54 = vld [vmem:[%s3843_s27 + $0x160] sm:$0xff]   ;;  %v3433_v58 = vld [vmem:[%s3843_s27 + $0x168] sm:$0xff]  }
  0x6b   : > { %3195 = vmatprep.subr.bf16.mxu1 %v3394_v17  ;;  %v3427_v52 = vld [vmem:[%s3843_s27 + $0x118] sm:$0xff]   ;;  %v3430_v55 = vld [vmem:[%s3843_s27 + $0x1e0] sm:$0xff]   ;;  %v3434_v59 = vld [vmem:[%s3843_s27 + $0x1e8] sm:$0xff]  }
  0x6c   : > { %v3428_v53 = vld [vmem:[%s3843_s27 + $0x198] sm:$0xff]   ;;  %v3431_v56 = vld [vmem:[%s3843_s27 + $0x120] sm:$0xff]   ;;  %v3435_v60 = vld [vmem:[%s3843_s27 + $0x128] sm:$0xff]  }
  0x6d   : > { %3174 = vmatpush3.bf16.msra.mxu0 %v3395_v18  ;;  %v3432_v57 = vld [vmem:[%s3843_s27 + $0x1a0] sm:$0xff]   ;;  %v3436_v61 = vld [vmem:[%s3843_s27 + $0x1a8] sm:$0xff]   ;;  %v3437_v62 = vld [vmem:[%s3843_s27 + $0x170] sm:$0xff]  }
  0x6e   : > { %3196 = vmatpush3.bf16.msra.mxu1 %v3396_v19  ;;  %3175 = vmatprep.subr.bf16.mxu0 %v3397_v20  ;;  %v3438_v63 = vld [vmem:[%s3843_s27 + $0x1f0] sm:$0xff]   ;;  %v3441_v2 = vld [vmem:[%s3843_s27 + $0x178] sm:$0xff]   ;;  %v3449_v12 = vld [vmem:[%s3932_s24] sm:$0xff]  }
  0x6f   : > { %3197 = vmatprep.subr.bf16.mxu1 %v3398_v21  ;;  %v3439_v0 = vld [vmem:[%s3843_s27 + $0x130] sm:$0xff]   ;;  %v3442_v3 = vld [vmem:[%s3843_s27 + $0x1f8] sm:$0xff]   ;;  %v3450_v14 = vld [vmem:[%s3932_s24 + $0x8] sm:$0xff]  }
  0x70   : > { %v3440_v1 = vld [vmem:[%s3843_s27 + $0x1b0] sm:$0xff]   ;;  %v3443_v4 = vld [vmem:[%s3843_s27 + $0x138] sm:$0xff]   ;;  %v3453_v17 = vld [vmem:[%s3932_s24 + $0x20] sm:$0xff]  }
  0x71   : > { %3176 = vmatpush3.bf16.msra.mxu0 %v3399_v22  ;;  %v3444_v5 = vld [vmem:[%s3843_s27 + $0x1b8] sm:$0xff]   ;;  %v519_v6 = vld [vmem:[%s3891_s12 + $0x10] sm:$0xff]  ;;  %v3454_v18 = vld [vmem:[%s3932_s24 + $0x28] sm:$0xff]   ;;  %s504_s27 = scalar_lea.vmem %s4198_s1, %s2919_s15  ;;  %s515_s15 = scalar_lea.vmem %s4202_s5, %s3878_s23 }
  0x72   : > { %3198 = vmatpush3.bf16.msra.mxu1 %v3400_v23  ;;  %3177 = vmatprep.subr.bf16.mxu0 %v3401_v24  ;;  %v2927_v7 = vcombine.low %v519_v6, %v519_v6  ;;  %v2928_v8 = vcombine.high %v519_v6, %v519_v6  ;;  %v520_v9 = vld [vmem:[%s3891_s12 + $0x18] sm:$0xff]  ;;  %v3451_v15 = vld [vmem:[%s3932_s24 + $0x10] sm:$0xff]   ;;  %v1344_v21 = vld [vmem:[%s504_s27] sm:$0xff]  ;;  %s507_s12 = scalar_lea.vmem %s4200_s3, %s3878_s23  ;;  %s3634_s23 = smov 96  }
  0x73   : > { %3199 = vmatprep.subr.bf16.mxu1 %v3402_v25  ;;  %v2929_v10 = vcombine.low %v520_v9, %v520_v9  ;;  %v2930_v11 = vcombine.high %v520_v9, %v520_v9  ;;  %v3452_v16 = vld [vmem:[%s3932_s24 + $0x18] sm:$0xff]   ;;  %v3455_v19 = vld [vmem:[%s3932_s24 + $0x30] sm:$0xff]   ;;  %1346 = vrot.lane.b32.xlu0 %v1344_v21, %s3633_s25  ;;  %v2922_v24 = vld [vmem:[%s507_s12] ss:$0 sm:$0xff]  ;;  %s2915_s27 = sshll.u32 %s3839_s26, 3 }
  0x74   : > { %v3456_v20 = vld [vmem:[%s3932_s24 + $0x38] sm:$0xff]   ;;  %v1451_v6 = vld [vmem:[#allocation5 + $0x68] sm:$0xff] }
  0x75   : > { %3178 = vmatpush3.bf16.msra.mxu0 %v3403_v26  ;;  %v1459_v9 = vld [vmem:[#allocation5 + $0xa8] sm:$0xff] }
  0x76   : > { %3200 = vmatpush3.bf16.msra.mxu1 %v3404_v27  ;;  %3179 = vmatprep.subr.bf16.mxu0 %v3405_v28 }
  0x77   : > { %3201 = vmatprep.subr.bf16.mxu1 %v3406_v29 }
  0x79   : > { %3180 = vmatpush3.bf16.msra.mxu0 %v3407_v30 }
  0x7a   : > { %3202 = vmatpush3.bf16.msra.mxu1 %v3408_v31  ;;  %3209 = vmatprep.subr.bf16.mxu0 %v3413_v38 }
  0x7b   : > { %3231 = vmatprep.subr.bf16.mxu1 %v3414_v39 }
  0x7c   : > { %1101 = vmatmul.mubr.bf16.vlgmr.msra.gmra.mrb[0].mxu0 %v2923_v34 }
  0x7d   : > { %1141 = vmatmul.mubr.bf16.vlgmr.msra.gmra.mrb[0].mxu1 %v2925_v36  ;;  %3210 = vmatpush3.bf16.msra.mxu0 %v3415_v40 }
  0x7e   : > { %3232 = vmatpush3.bf16.msra.mxu1 %v3416_v41  ;;  %3211 = vmatprep.subr.bf16.mxu0 %v3417_v42 }
  0x7f   : > { %3233 = vmatprep.subr.bf16.mxu1 %v3418_v43  ;;  %1180 = vmatprep.mubr.bf16.mxu0 %v2928_v8  ;;  %v1455_v8 = vld [vmem:[#allocation5 + $0x88] sm:$0xff] }
  0x80   : > { %1220 = vmatprep.mubr.bf16.mxu1 %v2930_v11  ;;  %v3027_v11 = vcombine.high %v1455_v8, %v1459_v9 }
  0x81   : > { %3212 = vmatpush3.bf16.msra.mxu0 %v3419_v44 }
  0x82   : > { %3234 = vmatpush3.bf16.msra.mxu1 %v3420_v45  ;;  %3213 = vmatprep.subr.bf16.mxu0 %v3421_v46 }
  0x83   : > { %3235 = vmatprep.subr.bf16.mxu1 %v3422_v47 }
  0x85   : > { %3214 = vmatpush3.bf16.msra.mxu0 %v3423_v48 }
  0x86   : > { %3236 = vmatpush3.bf16.msra.mxu1 %v3424_v49  ;;  %3215 = vmatprep.subr.bf16.mxu0 %v3425_v50  ;;  %v3457_v49 = vld [vmem:[%s4203_s6] sm:$0xff]  }
  0x87   : > { %3237 = vmatprep.subr.bf16.mxu1 %v3426_v51  ;;  %v2995_v50 = vld [vmem:[%s515_s15] ss:$0 sm:$0xff]  ;;  %s3636_s15 = smov [#allocation7]  }
  0x88   : > { %s3525_s28 = sshll.u32 %s3636_s15, 4  ;;  %s3526_s28 = int_to_ptr.vmem [resolvable:$false] %s3525_s28 }
  0x89   : > { %3216 = vmatpush3.bf16.msra.mxu0 %v3427_v52 }
  0x8a   : > { %3238 = vmatpush3.bf16.msra.mxu1 %v3428_v53  ;;  %3217 = vmatprep.subr.bf16.mxu0 %v3429_v54 }
  0x8b   : > { %3239 = vmatprep.subr.bf16.mxu1 %v3430_v55 }
  0x8d   : > { %3218 = vmatpush3.bf16.msra.mxu0 %v3431_v56 }
  0x8e   : > { %3240 = vmatpush3.bf16.msra.mxu1 %v3432_v57  ;;  %3219 = vmatprep.subr.bf16.mxu0 %v3433_v58  ;;  %v3458_v58 = vld [vmem:[%s4203_s6 + $0x8] sm:$0xff]  }
  0x8f   : > { %3241 = vmatprep.subr.bf16.mxu1 %v3434_v59 }
  0x91   : > { %3220 = vmatpush3.bf16.msra.mxu0 %v3435_v60 }
  0x92   : > { %3242 = vmatpush3.bf16.msra.mxu1 %v3436_v61  ;;  %3221 = vmatprep.subr.bf16.mxu0 %v3437_v62  ;;  %v1438_v62 = vld [vmem:[#allocation5] sm:$0xff] }
  0x93   : > { %3243 = vmatprep.subr.bf16.mxu1 %v3438_v63  ;;  %v1442_v63 = vld [vmem:[#allocation5 + $0x20] sm:$0xff] }
  0x94   : > { %v3008_v21 = vcombine.low %v1438_v62, %v1442_v63 }
  0x95   : > { %3222 = vmatpush3.bf16.msra.mxu0 %v3439_v0  ;;  %v1439_v0 = vld [vmem:[#allocation5 + $0x8] sm:$0xff] }
  0x96   : > { %3244 = vmatpush3.bf16.msra.mxu1 %v3440_v1  ;;  %3223 = vmatprep.subr.bf16.mxu0 %v3441_v2  ;;  %v3009_v1 = vcombine.high %v1438_v62, %v1442_v63  ;;  %v1443_v2 = vld [vmem:[#allocation5 + $0x28] sm:$0xff] }
  0x97   : > { %3245 = vmatprep.subr.bf16.mxu1 %v3442_v3  ;;  %v3010_v3 = vcombine.low %v1439_v0, %v1443_v2  ;;  %v1499_v63 = vld [vmem:[#allocation5 + $0x1e8] sm:$0xff] }
  0x99   : > { %3224 = vmatpush3.bf16.msra.mxu0 %v3443_v4  ;;  %v3011_v4 = vcombine.high %v1439_v0, %v1443_v2 }
  0x9a   : > { %3246 = vmatpush3.bf16.msra.mxu1 %v3444_v5  ;;  %3268 = vmatprep.subr.bf16.mxu0 %v3631_v13  ;;  %v1447_v5 = vld [vmem:[#allocation5 + $0x48] sm:$0xff] }
  0x9b   : > { %3288 = vmatprep.subr.bf16.mxu1 %v3631_v13 }
  0x9c   : > { %1181 = vmatmul.mubr.bf16.vlgmr.msra.gmra.mrb[4].mxu0 %v2927_v7  ;;  %v3019_v7 = vcombine.high %v1447_v5, %v1451_v6 }
  0x9d   : > { %1221 = vmatmul.mubr.bf16.vlgmr.msra.gmra.mrb[4].mxu1 %v2929_v10  ;;  %3269 = vmatpush3.bf16.msra.mxu0 %v3449_v12  ;;  %v3018_v10 = vcombine.low %v1447_v5, %v1451_v6  ;;  %v1463_v12 = vld [vmem:[#allocation5 + $0xc8] sm:$0xff]  ;;  %v1441_v5 = vld [vmem:[#allocation5 + $0x18] sm:$0xff] }
  0x9e   : > { %3270 = vmatprep.subr.bf16.mxu0 %v3631_v13  ;;  %3284 = vmatprep.mubr.msk.bf16.mxu0 %vm3632_vm0, %v3631_v13 }
  0x9f   : > { %3292 = vmatprep.mubr.msk.bf16.mxu1 %vm3632_vm0, %v3631_v13  ;;  %3289 = vmatpush3.bf16.msra.mxu1 %v3457_v49  ;;  %v1482_v49 = vld [vmem:[#allocation5 + $0x160] sm:$0xff] }
  0xa0   : > { %3290 = vmatprep.subr.bf16.mxu1 %v3631_v13 }
  0xa1   : > { %3271 = vmatpush3.bf16.msra.mxu0 %v3450_v14  ;;  %v1467_v14 = vld [vmem:[#allocation5 + $0xe8] sm:$0xff] }
  0xa2   : > { %3272 = vmatprep.subr.bf16.mxu0 %v3631_v13 }
  0xa3   : > { %3291 = vmatpush3.bf16.msra.mxu1 %v3458_v58 }
  0xa4   : > { %1864 = vmatprep.subr.bf16.mxu1 %v3009_v1 }
  0xa5   : > { %3273 = vmatpush3.bf16.msra.mxu0 %v3451_v15 }
  0xa6   : > { %3274 = vmatprep.subr.bf16.mxu0 %v3631_v13 }
  0xa9   : > { %3275 = vmatpush3.bf16.msra.mxu0 %v3452_v16  ;;  %v1446_v16 = vld [vmem:[#allocation5 + $0x40] sm:$0xff] }
  0xaa   : > { %3276 = vmatprep.subr.bf16.mxu0 %v3631_v13 }
  0xad   : > { %3277 = vmatpush3.bf16.msra.mxu0 %v3453_v17  ;;  %v1450_v17 = vld [vmem:[#allocation5 + $0x60] sm:$0xff] }
  0xae   : > { %3278 = vmatprep.subr.bf16.mxu0 %v3631_v13 }
  0xb1   : > { %3279 = vmatpush3.bf16.msra.mxu0 %v3454_v18  ;;  %v3026_v18 = vcombine.low %v1455_v8, %v1459_v9 }
  0xb2   : > { %3280 = vmatprep.subr.bf16.mxu0 %v3631_v13 }
  0xb5   : > { %3281 = vmatpush3.bf16.msra.mxu0 %v3455_v19 }
  0xb6   : > { %3282 = vmatprep.subr.bf16.mxu0 %v3631_v13 }
  0xb9   : > { %3283 = vmatpush3.bf16.msra.mxu0 %v3456_v20  ;;  %v3035_v20 = vcombine.high %v1463_v12, %v1467_v14 }
  0xba   : > { %1905 = vmatprep.subr.bf16.mxu0 %v3011_v4  ;;  %v1444_v4 = vld [vmem:[#allocation5 + $0x30] sm:$0xff] }
  0xe5   : > { %v1347_v59 = vpop.permute.xlu0 %1346 }
 0x14f   : > { %v3181_v22 = vpop.f32.mrb[0].mxu0 }
 0x150   : > { %v3203_v23 = vpop.f32.mrb[0].mxu1  ;;  %v3182_v25 = vpop.f32.mrb[1].mxu0 }
 0x151   : > { %v3204_v26 = vpop.f32.mrb[1].mxu1  ;;  %v3183_v27 = vadd.f32 %v3182_v25, %v3181_v22  ;;  %v3184_v29 = vpop.f32.mrb[2].mxu0  ;;  %v1471_v22 = vld [vmem:[#allocation5 + $0x108] sm:$0xff]  ;;  %v3017_v25 = vcombine.high %v1446_v16, %v1450_v17 }
 0x152   : > { %v3205_v28 = vadd.f32 %v3204_v26, %v3203_v23  ;;  %v3206_v30 = vpop.f32.mrb[2].mxu1  ;;  %v3185_v31 = vpop.f32.mrb[3].mxu0  ;;  %v1475_v23 = vld [vmem:[#allocation5 + $0x128] sm:$0xff]  ;;  %v1454_v26 = vld [vmem:[#allocation5 + $0x80] sm:$0xff] }
 0x153   : > { %v3207_v32 = vpop.f32.mrb[3].mxu1  ;;  %v1103_v33 = vadd.f32 %v3183_v27, %v2922_v24  ;;  %v1458_v27 = vld [vmem:[#allocation5 + $0xa0] sm:$0xff]  ;;  %v3043_v29 = vcombine.high %v1471_v22, %v1475_v23  ;;  %v3016_v30 = vcombine.low %v1446_v16, %v1450_v17  ;;  %v1479_v31 = vld [vmem:[#allocation5 + $0x148] sm:$0xff] }
 0x154   : > { %v1483_v32 = vld [vmem:[#allocation5 + $0x168] sm:$0xff]  ;;  %v3004_v17 = vld [vmem:[%s4204_s7] ss:$0 sm:$0xff] }
 0x155   : > { %v1143_v34 = vadd.f32 %v3205_v28, %v1103_v33  ;;  %v3034_v28 = vcombine.low %v1463_v12, %v1467_v14  ;;  %v3025_v33 = vcombine.high %v1454_v26, %v1458_v27 }
 0x16f   : > { %v3225_v35 = vpop.f32.mrb[4].mxu0 }
 0x170   : > { %v3247_v36 = vpop.f32.mrb[4].mxu1  ;;  %v3226_v37 = vpop.f32.mrb[5].mxu0 }
 0x171   : > { %v3248_v38 = vpop.f32.mrb[5].mxu1  ;;  %v3227_v39 = vadd.f32 %v3226_v37, %v3225_v35  ;;  %v3228_v41 = vpop.f32.mrb[6].mxu0  ;;  %v1466_v35 = vld [vmem:[#allocation5 + $0xe0] sm:$0xff]  ;;  %v3051_v37 = vcombine.high %v1479_v31, %v1483_v32 }
 0x172   : > { %v3249_v40 = vadd.f32 %v3248_v38, %v3247_v36  ;;  %v3250_v42 = vpop.f32.mrb[6].mxu1  ;;  %v3229_v43 = vpop.f32.mrb[7].mxu0  ;;  %v3042_v36 = vcombine.low %v1471_v22, %v1475_v23  ;;  %v3024_v38 = vcombine.low %v1454_v26, %v1458_v27  ;;  %v1452_v23 = vld [vmem:[#allocation5 + $0x70] sm:$0xff]  ;;  %v1453_v26 = vld [vmem:[#allocation5 + $0x78] sm:$0xff] }
 0x173   : > { %v3251_v44 = vpop.f32.mrb[7].mxu1  ;;  %v1183_v45 = vadd.f32 %v3227_v39, %v1143_v34  ;;  %v1462_v34 = vld [vmem:[#allocation5 + $0xc0] sm:$0xff]  ;;  %v1487_v39 = vld [vmem:[#allocation5 + $0x188] sm:$0xff] }
 0x174   : > { %v3033_v41 = vcombine.high %v1462_v34, %v1466_v35  ;;  %v1470_v42 = vld [vmem:[#allocation5 + $0x100] sm:$0xff]  ;;  %v3050_v44 = vcombine.low %v1479_v31, %v1483_v32  ;;  %v1456_v31 = vld [vmem:[#allocation5 + $0x90] sm:$0xff] }
 0x175   : > { %v1223_v46 = vadd.f32 %v3249_v40, %v1183_v45  ;;  %v1491_v40 = vld [vmem:[#allocation5 + $0x1a8] sm:$0xff]  ;;  %v1474_v43 = vld [vmem:[#allocation5 + $0x120] sm:$0xff]  ;;  %v1460_v32 = vld [vmem:[#allocation5 + $0xb0] sm:$0xff] }
 0x176   : > { %v3059_v45 = vcombine.high %v1487_v39, %v1491_v40 }
 0x177   : > { %v1228_v47 = vmax.f32 %v1223_v46, 0.0  ;;  %v3032_v46 = vcombine.low %v1462_v34, %v1466_v35  ;;  %v1461_v34 = vld [vmem:[#allocation5 + $0xb8] sm:$0xff] }
 0x179   : > { %v1229_v48 = vpack.c.bf16 %v1228_v47, %v1228_v47  ;;  %v3041_v47 = vcombine.high %v1470_v42, %v1474_v43 }
 0x17b   : > { %3285 = vmatmul.mubr.bf16.vlgmr.msra.gmra.mrb[8].mxu0 %v1229_v48  ;;  %v1478_v48 = vld [vmem:[#allocation5 + $0x140] sm:$0xff] }
 0x17c   : > { %1906 = vmatpush1.bf16.msra.mxu0 %v3010_v3  ;;  %v1440_v3 = vld [vmem:[#allocation5 + $0x10] sm:$0xff] }
 0x17d   : > { %1907 = vmatprep.subr.bf16.mxu0 %v3019_v7  ;;  %v3013_v6 = vcombine.high %v1440_v3, %v1444_v4  ;;  %v1445_v7 = vld [vmem:[#allocation5 + $0x38] sm:$0xff]  ;;  %v3012_v8 = vcombine.low %v1440_v3, %v1444_v4 }
 0x17e   : > { %v3014_v9 = vcombine.low %v1441_v5, %v1445_v7  ;;  %v1493_v3 = vld [vmem:[#allocation5 + $0x1b8] sm:$0xff] }
 0x180   : > { %1908 = vmatpush1.bf16.msra.mxu0 %v3018_v10  ;;  %v3015_v10 = vcombine.high %v1441_v5, %v1445_v7 }
 0x181   : > { %1909 = vmatprep.subr.bf16.mxu0 %v3027_v11  ;;  %v3635_v11 = vmov 0  }
 0x182   : > { %1937 = vmatprep.mubr.bf16.mxu0 %v3635_v11 }
 0x184   : > { %1910 = vmatpush1.bf16.msra.mxu0 %v3026_v18 }
 0x185   : > { %1911 = vmatprep.subr.bf16.mxu0 %v3035_v20 }
 0x188   : > { %1912 = vmatpush1.bf16.msra.mxu0 %v3034_v28 }
 0x189   : > { %1913 = vmatprep.subr.bf16.mxu0 %v3043_v29 }
 0x18c   : > { %1914 = vmatpush1.bf16.msra.mxu0 %v3042_v36 }
 0x18d   : > { %1915 = vmatprep.subr.bf16.mxu0 %v3051_v37  ;;  %v3029_v37 = vcombine.high %v1456_v31, %v1460_v32 }
 0x190   : > { %1916 = vmatpush1.bf16.msra.mxu0 %v3050_v44 }
 0x191   : > { %1917 = vmatprep.subr.bf16.mxu0 %v3059_v45 }
 0x24e   : > { %v1335_v51 = vpop.f32.mrb[8].mxu0 }
 0x24f   : > { %v3975_v52 = vadd.f32 %v2995_v50, %v1335_v51  ;;  %v3286_v53 = vpop.f32.mrb[9].mxu0  ;;  %v3058_v50 = vcombine.low %v1487_v39, %v1491_v40  ;;  %v3040_v51 = vcombine.low %v1470_v42, %v1474_v43  ;;  %v1464_v39 = vld [vmem:[#allocation5 + $0xd0] sm:$0xff]  ;;  %v1469_v42 = vld [vmem:[#allocation5 + $0xf8] sm:$0xff]  ;;  %v3028_v43 = vcombine.low %v1456_v31, %v1460_v32 }
 0x250   : > { %v1338_v54 = vpop.f32.mrb[10].mxu0  ;;  %v3049_v53 = vcombine.high %v1478_v48, %v1482_v49  ;;  %v1468_v40 = vld [vmem:[#allocation5 + $0xf0] sm:$0xff] }
 0x251   : > { %v1341_v55 = vmul.f32 0.5, %v3975_v52  ;;  %v3287_v56 = vpop.f32.mrb[11].mxu0  ;;  %v1486_v54 = vld [vmem:[#allocation5 + $0x180] sm:$0xff]  ;;  %1918 = vmatpush1.bf16.msra.mxu0 %v3058_v50  ;;  %v3037_v45 = vcombine.high %v1464_v39, %v1468_v40  ;;  %v1477_v50 = vld [vmem:[#allocation5 + $0x138] sm:$0xff] }
 0x252   : > { %v3048_v56 = vcombine.low %v1478_v48, %v1482_v49  ;;  %v1476_v48 = vld [vmem:[#allocation5 + $0x130] sm:$0xff]  ;;  %v1473_v49 = vld [vmem:[#allocation5 + $0x118] sm:$0xff] }
 0x253   : > { %v1342_v57 = vmul.f32 1.442695, %v1341_v55  ;;  %v1490_v55 = vld [vmem:[#allocation5 + $0x1a0] sm:$0xff] }
 0x254   : > { %v3056_v58 = vcombine.low %v1486_v54, %v1490_v55 }
 0x255   : > { %3461 = vpow2.f32 %v1342_v57  ;;  %v3057_v57 = vcombine.high %v1486_v54, %v1490_v55  ;;  %v3047_v55 = vcombine.high %v1473_v49, %v1477_v50 }
 0x25f   : > { %v3462_v60 = vpop.eup %3461 }
 0x260   : > { %v1349_v61 = vmul.f32 %v3462_v60, %v1347_v59  ;;  %1356 = vrot.lane.b32.xlu1 %v3462_v60, %s3633_s25  ;;  %v1494_v59 = vld [vmem:[#allocation5 + $0x1c0] sm:$0xff]  ;;  %s3993_s25 = scalar_lea.vmem [#allocation7], %s2915_s27 }
 0x261   : > { %v1498_v60 = vld [vmem:[#allocation5 + $0x1e0] sm:$0xff]  ;;  %s2723_s30 = sshll.u32 %s3993_s25, 4  ;;  %s2724_s30 = int_to_ptr.vmem [resolvable:$true] %s2723_s30 }
 0x262   : > { %1351 = vrot.lane.b32.xlu0 %v1349_v61, %s3634_s23  ;;  %v1495_v61 = vld [vmem:[#allocation5 + $0x1c8] sm:$0xff]  ;;  %v3065_v62 = vcombine.high %v1494_v59, %v1498_v60  ;;  %v3064_v0 = vcombine.low %v1494_v59, %v1498_v60  ;;  %v1485_v59 = vld [vmem:[#allocation5 + $0x178] sm:$0xff]  ;;  %s3521_s24 = scalar_lea.vmem %s2724_s30, 128  ;;  %p3528_p13 = scmp.lt.s32.totalorder %s2724_s30, %s3526_s28 }
 0x263   : > { %v3066_v1 = vcombine.low %v1495_v61, %v1499_v63  ;;  %v3067_v2 = vcombine.high %v1495_v61, %v1499_v63  ;;  %v3046_v61 = vcombine.low %v1473_v49, %v1477_v50  ;;  %v2136_v50 = vld [vmem:[#allocation5 + $0x300] sm:$0xff]  ;;  %p3522_p6 = scmp.ne.s32.totalorder %s2724_s30, %s3521_s24 }
 0x265   : > { %1919 = vmatprep.subr.bf16.mxu0 %v3067_v2  ;;  %v1489_v2 = vld [vmem:[#allocation5 + $0x198] sm:$0xff]  ;;  %p3523_p8 = pnand %p3522_p6, %p3791_p12 }
 0x266   : > { %1920 = vmatpush1.bf16.msra.mxu0 %v3066_v1  ;;  %v1492_v1 = vld [vmem:[#allocation5 + $0x1b0] sm:$0xff]  ;;  %v3063_v7 = vcombine.high %v1489_v2, %v1493_v3 }
 0x267   : > { %1987 = vmatprep.subr.bf16.mxu0 %v3015_v10  ;;  %v1497_v10 = vld [vmem:[#allocation5 + $0x1d8] sm:$0xff]  ;;  %p3524_p10 = pneg %p3523_p8 }
 0x2d2   : > { %v1357_v12 = vpop.permute.xlu1 %1356 }
 0x2d3   : > { %v1364_v14 = vsel %vm1363_vm2, %v3975_v52, %v1357_v12  ;;  %v1501_v12 = vld [vmem:[#allocation5 + $0x1f8] sm:$0xff] }
 0x2d4   : > { %v1352_v15 = vpop.permute.xlu0 %1351 }
 0x2d5   : > { %v1354_v19 = vadd.f32 %v1352_v15, %v3975_v52 }
 0x2d7   : > { %v3984_v24 = vpack.c.bf16 %v1354_v19, %v1354_v19  ;;  %1360 = vrot.lane.b32.xlu1 %v1354_v19, %s3634_s23  ;;  %s3527_s23 = scalar_lea.vmem %s3526_s28, 256 }
 0x2d8   : > { %p3529_p3 = scmp.lt.s32.totalorder %s3527_s23, %s3521_s24 }
 0x2d9   : > { %3293 = vmatmul.mubr.msk.bf16.vlgmr.msra.gmra.mrb[8].mxu1 %vm1392_vm1, %v3984_v24 }
 0x2da   : > { %1865 = vmatpush1.bf16.msra.mxu1 %v3008_v21  ;;  %1896 = vmatprep.mubr.bf16.mxu1 %v3635_v11  ;;  %v1448_v21 = vld [vmem:[#allocation5 + $0x50] sm:$0xff]  ;;  %p3530_p7 = por %p3529_p3, %p3528_p13 }
 0x2db   : > { %1866 = vmatprep.subr.bf16.mxu1 %v3017_v25  ;;  %v1449_v25 = vld [vmem:[#allocation5 + $0x58] sm:$0xff]  ;;  %v3021_v29 = vcombine.high %v1448_v21, %v1452_v23  ;;  %v3020_v35 = vcombine.low %v1448_v21, %v1452_v23  ;;  %v2108_v23 = vld [vmem:[#allocation5 + $0x220] sm:$0xff] }
 0x2dc   : > { %v3022_v36 = vcombine.low %v1449_v25, %v1453_v26  ;;  %v3460_v21 = vld [vmem:[%s4203_s6 + $0x18] sm:$0xff]   ;;  %p3531_p9 = pnand %p3530_p7, %p3524_p10 }
 0x2de   : > { %1867 = vmatpush1.bf16.msra.mxu1 %v3016_v30  ;;  %v3023_v30 = vcombine.high %v1449_v25, %v1453_v26  ;;  %v2105_v25 = vld [vmem:[#allocation5 + $0x208] sm:$0xff] }
 0x2df   : > { %1868 = vmatprep.subr.bf16.mxu1 %v3025_v33  ;;  %v1457_v33 = vld [vmem:[#allocation5 + $0x98] sm:$0xff] }
 0x2e0   : > { %v3030_v44 = vcombine.low %v1457_v33, %v1461_v34 }
 0x2e2   : > { %1869 = vmatpush1.bf16.msra.mxu1 %v3024_v38  ;;  %v3031_v38 = vcombine.high %v1457_v33, %v1461_v34  ;;  %v2117_v33 = vld [vmem:[#allocation5 + $0x268] sm:$0xff]  ;;  %v2120_v34 = vld [vmem:[#allocation5 + $0x280] sm:$0xff] }
 0x2e3   : > { %1870 = vmatprep.subr.bf16.mxu1 %v3033_v41  ;;  %v1465_v41 = vld [vmem:[#allocation5 + $0xd8] sm:$0xff] }
 0x2e6   : > { %1871 = vmatpush1.bf16.msra.mxu1 %v3032_v46  ;;  %v3039_v46 = vcombine.high %v1465_v41, %v1469_v42 }
 0x2e7   : > { %1872 = vmatprep.subr.bf16.mxu1 %v3041_v47  ;;  %v1472_v47 = vld [vmem:[#allocation5 + $0x110] sm:$0xff] }
 0x2e8   : > { %v3045_v54 = vcombine.high %v1472_v47, %v1476_v48  ;;  %v3044_v60 = vcombine.low %v1472_v47, %v1476_v48 }
 0x2ea   : > { %1873 = vmatpush1.bf16.msra.mxu1 %v3040_v51  ;;  %v3036_v51 = vcombine.low %v1464_v39, %v1468_v40 }
 0x2eb   : > { %1874 = vmatprep.subr.bf16.mxu1 %v3049_v53  ;;  %v3038_v53 = vcombine.low %v1465_v41, %v1469_v42  ;;  %v2128_v42 = vld [vmem:[#allocation5 + $0x2c0] sm:$0xff] }
 0x2ee   : > { %1875 = vmatpush1.bf16.msra.mxu1 %v3048_v56  ;;  %v1480_v56 = vld [vmem:[#allocation5 + $0x150] sm:$0xff] }
 0x2ef   : > { %1876 = vmatprep.subr.bf16.mxu1 %v3057_v57  ;;  %v1484_v57 = vld [vmem:[#allocation5 + $0x170] sm:$0xff] }
 0x2f0   : > { %v3052_v4 = vcombine.low %v1480_v56, %v1484_v57 }
 0x2f2   : > { %1877 = vmatpush1.bf16.msra.mxu1 %v3056_v58  ;;  %v1481_v58 = vld [vmem:[#allocation5 + $0x158] sm:$0xff] }
 0x2f3   : > { %1878 = vmatprep.subr.bf16.mxu1 %v3065_v62  ;;  %v3053_v62 = vcombine.high %v1480_v56, %v1484_v57  ;;  %v3055_v63 = vcombine.high %v1481_v58, %v1485_v59  ;;  %v3054_v5 = vcombine.low %v1481_v58, %v1485_v59 }
 0x2f6   : > { %1879 = vmatpush1.bf16.msra.mxu1 %v3064_v0  ;;  %v1488_v0 = vld [vmem:[#allocation5 + $0x190] sm:$0xff] }
 0x2f7   : > { %1946 = vmatprep.subr.bf16.mxu1 %v3013_v6  ;;  %v3061_v6 = vcombine.high %v1488_v0, %v1492_v1 }
 0x349   : > { %v1361_v15 = vpop.permute.xlu1 %1360 }
 0x34a   : > { %v1366_v16 = vsel %vm1365_vm3, %v1364_v14, %v1361_v15  ;;  %v3060_v14 = vcombine.low %v1488_v0, %v1492_v1  ;;  %v3062_v15 = vcombine.low %v1489_v2, %v1493_v3  ;;  %v2149_v1 = vld [vmem:[#allocation5 + $0x368] sm:$0xff] }
 0x34b   : > { %1367 = vst [vmem:[%s3993_s25] sm:$0xff] %v1366_v16 }
 0x3ac   : > { %v1430_v18 = vpop.f32.mrb[8].mxu1 }
 0x3ad   : > { %v1431_v19 = vadd.f32 %v3004_v17, %v1430_v18  ;;  %v3294_v20 = vpop.f32.mrb[9].mxu1  ;;  %v3071_v17 = vcombine.high %v1497_v10, %v1501_v12 }
 0x3ae   : > { %v1433_v22 = vpop.f32.mrb[10].mxu1  ;;  %v3459_v20 = vld [vmem:[%s4203_s6 + $0x10] sm:$0xff]  }
 0x3af   : > { %v1436_v27 = vmax.f32 %v1431_v19, 0.0  ;;  %v3295_v52 = vpop.f32.mrb[11].mxu1  ;;  %v3070_v19 = vcombine.low %v1497_v10, %v1501_v12  ;;  %v2104_v22 = vld [vmem:[#allocation5 + $0x200] sm:$0xff]  ;;  %v2157_v10 = vld [vmem:[#allocation5 + $0x3a8] sm:$0xff] }
 0x3b0   : > { %v3082_v26 = vcombine.low %v2104_v22, %v2108_v23  ;;  %v2109_v52 = vld [vmem:[#allocation5 + $0x228] sm:$0xff] }
 0x3b1   : > { %v3999_v28 = vpack.c.bf16 %v1436_v27, %v1436_v27  ;;  %v3083_v27 = vcombine.high %v2104_v22, %v2108_v23  ;;  %v3085_v31 = vcombine.high %v2105_v25, %v2109_v52  ;;  %v4021_v23 = vld [vmem:[#allocation5 + $0x210] sm:$0xff] }
 0x3b3   : > { %1897 = vmatmul.mubr.bf16.vlgmr.msra.gmra.mrb[12].mxu1 %v3999_v28  ;;  %1938 = vmatmul.mubr.bf16.vlgmr.msra.gmra.mrb[12].mxu0 %v3999_v28 }
 0x3b4   : > { %1947 = vmatpush1.bf16.msra.mxu1 %v3012_v8  ;;  %1988 = vmatpush1.bf16.msra.mxu0 %v3014_v9  ;;  %v1496_v8 = vld [vmem:[#allocation5 + $0x1d0] sm:$0xff] }
 0x3b5   : > { %1948 = vmatprep.subr.bf16.mxu1 %v3021_v29  ;;  %1989 = vmatprep.subr.bf16.mxu0 %v3023_v30  ;;  %v1500_v9 = vld [vmem:[#allocation5 + $0x1f0] sm:$0xff]  ;;  %v2116_v29 = vld [vmem:[#allocation5 + $0x260] sm:$0xff]  ;;  %v3084_v30 = vcombine.low %v2105_v25, %v2109_v52  ;;  %v4029_v52 = vld [vmem:[#allocation5 + $0x238] sm:$0xff] }
 0x3b6   : > { %1978 = vmatprep.mubr.bf16.mxu1 %v3635_v11  ;;  %2019 = vmatprep.mubr.bf16.mxu0 %v3635_v11  ;;  %v3069_v16 = vcombine.high %v1496_v8, %v1500_v9  ;;  %v3068_v18 = vcombine.low %v1496_v8, %v1500_v9  ;;  %v4023_v25 = vld [vmem:[#allocation5 + $0x230] sm:$0xff] }
 0x3b8   : > { %1949 = vmatpush1.bf16.msra.mxu1 %v3020_v35  ;;  %1990 = vmatpush1.bf16.msra.mxu0 %v3022_v36  ;;  %v2124_v36 = vld [vmem:[#allocation5 + $0x2a0] sm:$0xff] }
 0x3b9   : > { %1950 = vmatprep.subr.bf16.mxu1 %v3029_v37  ;;  %1991 = vmatprep.subr.bf16.mxu0 %v3031_v38  ;;  %v2125_v37 = vld [vmem:[#allocation5 + $0x2a8] sm:$0xff]  ;;  %v3099_v40 = vcombine.high %v2120_v34, %v2124_v36 }
 0x3bc   : > { %1951 = vmatpush1.bf16.msra.mxu1 %v3028_v43  ;;  %1992 = vmatpush1.bf16.msra.mxu0 %v3030_v44  ;;  %v2132_v43 = vld [vmem:[#allocation5 + $0x2e0] sm:$0xff]  ;;  %v2129_v44 = vld [vmem:[#allocation5 + $0x2c8] sm:$0xff] }
 0x3bd   : > { %1952 = vmatprep.subr.bf16.mxu1 %v3037_v45  ;;  %1993 = vmatprep.subr.bf16.mxu0 %v3039_v46  ;;  %v2133_v45 = vld [vmem:[#allocation5 + $0x2e8] sm:$0xff]  ;;  %v3098_v46 = vcombine.low %v2120_v34, %v2124_v36  ;;  %v3107_v48 = vcombine.high %v2128_v42, %v2132_v43  ;;  %v1502_v34 = vld [vmem:[%s4206_s9] sm:$0xff] }
 0x3be   : > { %v3109_v49 = vcombine.high %v2129_v44, %v2133_v45  ;;  %v3108_v56 = vcombine.low %v2129_v44, %v2133_v45 }
 0x3c0   : > { %1953 = vmatpush1.bf16.msra.mxu1 %v3036_v51  ;;  %1994 = vmatpush1.bf16.msra.mxu0 %v3038_v53  ;;  %v2140_v51 = vld [vmem:[#allocation5 + $0x320] sm:$0xff]  ;;  %v2137_v53 = vld [vmem:[#allocation5 + $0x308] sm:$0xff] }
 0x3c1   : > { %1954 = vmatprep.subr.bf16.mxu1 %v3045_v54  ;;  %1995 = vmatprep.subr.bf16.mxu0 %v3047_v55  ;;  %v2141_v54 = vld [vmem:[#allocation5 + $0x328] sm:$0xff]  ;;  %v3106_v55 = vcombine.low %v2128_v42, %v2132_v43  ;;  %v3115_v57 = vcombine.high %v2136_v50, %v2140_v51  ;;  %v3114_v59 = vcombine.low %v2136_v50, %v2140_v51 }
 0x3c2   : > { %v3117_v58 = vcombine.high %v2137_v53, %v2141_v54 }
 0x3c4   : > { %1955 = vmatpush1.bf16.msra.mxu1 %v3044_v60  ;;  %1996 = vmatpush1.bf16.msra.mxu0 %v3046_v61  ;;  %v3116_v60 = vcombine.low %v2137_v53, %v2141_v54  ;;  %v2144_v61 = vld [vmem:[#allocation5 + $0x340] sm:$0xff] }
 0x3c5   : > { %1956 = vmatprep.subr.bf16.mxu1 %v3053_v62  ;;  %1997 = vmatprep.subr.bf16.mxu0 %v3055_v63  ;;  %v2148_v62 = vld [vmem:[#allocation5 + $0x360] sm:$0xff]  ;;  %v2145_v63 = vld [vmem:[#allocation5 + $0x348] sm:$0xff] }
 0x3c6   : > { %v3123_v0 = vcombine.high %v2144_v61, %v2148_v62  ;;  %v3122_v2 = vcombine.low %v2144_v61, %v2148_v62  ;;  %v3124_v3 = vcombine.low %v2145_v63, %v2149_v1 }
 0x3c8   : > { %1957 = vmatpush1.bf16.msra.mxu1 %v3052_v4  ;;  %1998 = vmatpush1.bf16.msra.mxu0 %v3054_v5  ;;  %v3125_v4 = vcombine.high %v2145_v63, %v2149_v1  ;;  %v2152_v5 = vld [vmem:[#allocation5 + $0x380] sm:$0xff] }
 0x3c9   : > { %1958 = vmatprep.subr.bf16.mxu1 %v3061_v6  ;;  %1999 = vmatprep.subr.bf16.mxu0 %v3063_v7  ;;  %v2156_v6 = vld [vmem:[#allocation5 + $0x3a0] sm:$0xff]  ;;  %v2153_v7 = vld [vmem:[#allocation5 + $0x388] sm:$0xff] }
 0x3ca   : > { %v3130_v8 = vcombine.low %v2152_v5, %v2156_v6  ;;  %v3131_v9 = vcombine.high %v2152_v5, %v2156_v6  ;;  %v3132_v12 = vcombine.low %v2153_v7, %v2157_v10 }
 0x3cc   : > { %1959 = vmatpush1.bf16.msra.mxu1 %v3060_v14  ;;  %2000 = vmatpush1.bf16.msra.mxu0 %v3062_v15  ;;  %v3133_v14 = vcombine.high %v2153_v7, %v2157_v10  ;;  %v2160_v15 = vld [vmem:[#allocation5 + $0x3c0] sm:$0xff] }
 0x3cd   : > { %1960 = vmatprep.subr.bf16.mxu1 %v3069_v16  ;;  %2001 = vmatprep.subr.bf16.mxu0 %v3071_v17  ;;  %v2164_v16 = vld [vmem:[#allocation5 + $0x3e0] sm:$0xff]  ;;  %v2161_v17 = vld [vmem:[#allocation5 + $0x3c8] sm:$0xff] }
 0x3d0   : > { %1961 = vmatpush1.bf16.msra.mxu1 %v3068_v18  ;;  %2002 = vmatpush1.bf16.msra.mxu0 %v3070_v19  ;;  %v3139_v18 = vcombine.high %v2160_v15, %v2164_v16  ;;  %v2165_v19 = vld [vmem:[#allocation5 + $0x3e8] sm:$0xff] }
 0x3d1   : > { %3296 = vmatprep.subr.bf16.mxu1 %v3631_v13  ;;  %2572 = vmatprep.subr.bf16.mxu0 %v3085_v31  ;;  %v3141_v22 = vcombine.high %v2161_v17, %v2165_v19  ;;  %v1504_v31 = vlaneseq }
 0x3d3   : > { %1979 = vmatmul.mubr.bf16.vlgmr.msra.gmra.mrb[16].mxu1 %v3999_v28  ;;  %2020 = vmatmul.mubr.bf16.vlgmr.msra.gmra.mrb[16].mxu0 %v3999_v28  ;;  %v2112_v28 = vld [vmem:[#allocation5 + $0x240] sm:$0xff] }
 0x3d4   : > { %3297 = vmatpush3.bf16.msra.mxu1 %v3459_v20  ;;  %3300 = vmatprep.mubr.msk.bf16.mxu1 %vm3632_vm0, %v3631_v13  ;;  %v3091_v32 = vcombine.high %v2112_v28, %v2116_v29  ;;  %v3090_v38 = vcombine.low %v2112_v28, %v2116_v29  ;;  %v3138_v20 = vcombine.low %v2160_v15, %v2164_v16  ;;  %v2114_v15 = vld [vmem:[#allocation5 + $0x250] sm:$0xff] }
 0x3d5   : > { %3298 = vmatprep.subr.bf16.mxu1 %v3631_v13  ;;  %2604 = vmatprep.mubr.bf16.mxu0 %v3635_v11  ;;  %v2113_v13 = vld [vmem:[#allocation5 + $0x248] sm:$0xff]  ;;  %v3086_v28 = vcombine.low %v4021_v23, %v4023_v25 }
 0x3d6   : > { %v3093_v35 = vcombine.high %v2113_v13, %v2117_v33  ;;  %2573 = vmatpush1.bf16.msra.mxu0 %v3084_v30  ;;  %v3092_v39 = vcombine.low %v2113_v13, %v2117_v33 }
 0x3d8   : > { %3299 = vmatpush3.bf16.msra.mxu1 %v3460_v21  ;;  %2574 = vmatprep.subr.bf16.mxu0 %v3093_v35  ;;  %v3140_v21 = vcombine.low %v2161_v17, %v2165_v19  ;;  %v2118_v17 = vld [vmem:[#allocation5 + $0x270] sm:$0xff]  ;;  %v2119_v19 = vld [vmem:[#allocation5 + $0x278] sm:$0xff] }
 0x3d9   : > { %2531 = vmatprep.subr.bf16.mxu1 %v3083_v27  ;;  %v3087_v27 = vcombine.high %v4021_v23, %v4023_v25 }
 0x3da   : > { %2575 = vmatpush1.bf16.msra.mxu0 %v3092_v39 }
 0x3db   : > { %3301 = vmatmul.mubr.msk.bf16.vlgmr.msra.gmra.mrb[20].mxu1 %vm1392_vm1, %v3984_v24  ;;  %v2121_v24 = vld [vmem:[#allocation5 + $0x288] sm:$0xff] }
 0x3dc   : > { %2563 = vmatprep.mubr.bf16.mxu1 %v3635_v11  ;;  %2532 = vmatpush1.bf16.msra.mxu1 %v3082_v26  ;;  %v3101_v41 = vcombine.high %v2121_v24, %v2125_v37  ;;  %v3100_v47 = vcombine.low %v2121_v24, %v2125_v37  ;;  %v4025_v26 = vld [vmem:[#allocation5 + $0x218] sm:$0xff] }
 0x3dd   : > { %2533 = vmatprep.subr.bf16.mxu1 %v3091_v32  ;;  %v3088_v29 = vcombine.low %v4025_v26, %v4029_v52  ;;  %v3089_v30 = vcombine.high %v4025_v26, %v4029_v52  ;;  %v4037_v32 = vshrl.u32 %v1504_v31, 7  ;;  %v2122_v31 = vld [vmem:[#allocation5 + $0x290] sm:$0xff] }
 0x3de   : > { %2576 = vmatprep.subr.bf16.mxu0 %v3101_v41 }
 0x3df   : > { %2577 = vmatpush1.bf16.msra.mxu0 %v3100_v47  ;;  %v1506_v13 = vsub.s32 0, %v4037_v32  ;;  %v1514_v33 = vsub.s32 2, %v4037_v32  ;;  %v1510_v35 = vsub.s32 1, %v4037_v32  ;;  %v1518_v36 = vsub.s32 3, %v4037_v32 }
 0x3e0   : > { %2534 = vmatpush1.bf16.msra.mxu1 %v3090_v38  ;;  %2578 = vmatprep.subr.bf16.mxu0 %v3109_v49  ;;  %v1522_v53 = vsub.s32 4, %v4037_v32  ;;  %v1530_v54 = vsub.s32 6, %v4037_v32 }
 0x3e1   : > { %2535 = vmatprep.subr.bf16.mxu1 %v3099_v40  ;;  %v1507_v24 = vrot.slane %v1502_v34, %v1506_v13  ;;  %v1515_v37 = vrot.slane %v1502_v34, %v1514_v33  ;;  %v1511_v38 = vrot.slane %v1502_v34, %v1510_v35  ;;  %v1519_v39 = vrot.slane %v1502_v34, %v1518_v36 }
 0x3e3   : > { %2579 = vmatpush1.bf16.msra.mxu0 %v3108_v56  ;;  %v1534_v56 = vsub.s32 7, %v4037_v32 }
 0x3e4   : > { %2536 = vmatpush1.bf16.msra.mxu1 %v3098_v46  ;;  %2580 = vmatprep.subr.bf16.mxu0 %v3117_v58  ;;  %v1531_v58 = vrot.slane %v1502_v34, %v1530_v54 }
 0x3e5   : > { %2537 = vmatprep.subr.bf16.mxu1 %v3107_v48 }
 0x3e7   : > { %2581 = vmatpush1.bf16.msra.mxu0 %v3116_v60  ;;  %v1535_v60 = vrot.slane %v1502_v34, %v1534_v56 }
 0x3e8   : > { %2538 = vmatpush1.bf16.msra.mxu1 %v3106_v55  ;;  %2582 = vmatprep.subr.bf16.mxu0 %v3125_v4  ;;  %v1526_v55 = vsub.s32 5, %v4037_v32 }
 0x3e9   : > { %2539 = vmatprep.subr.bf16.mxu1 %v3115_v57  ;;  %v1523_v57 = vrot.slane %v1502_v34, %v1522_v53 }
 0x3eb   : > { %2583 = vmatpush1.bf16.msra.mxu0 %v3124_v3 }
 0x3ec   : > { %2540 = vmatpush1.bf16.msra.mxu1 %v3114_v59  ;;  %2584 = vmatprep.subr.bf16.mxu0 %v3133_v14  ;;  %v1527_v59 = vrot.slane %v1502_v34, %v1526_v55  ;;  %v2126_v34 = vld [vmem:[#allocation5 + $0x2b0] sm:$0xff] }
 0x3ed   : > { %2541 = vmatprep.subr.bf16.mxu1 %v3123_v0  ;;  %v3102_v23 = vcombine.low %v2122_v31, %v2126_v34 }
 0x3ef   : > { %2585 = vmatpush1.bf16.msra.mxu0 %v3132_v12 }
 0x3f0   : > { %2542 = vmatpush1.bf16.msra.mxu1 %v3122_v2  ;;  %2586 = vmatprep.subr.bf16.mxu0 %v3141_v22 }
 0x3f1   : > { %2543 = vmatprep.subr.bf16.mxu1 %v3131_v9  ;;  %v3077_v9 = vld [vmem:[%s4204_s7 + $0x1] ss:$0 sm:$0xff] }
 0x3f3   : > { %2587 = vmatpush1.bf16.msra.mxu0 %v3140_v21 }
 0x3f4   : > { %2544 = vmatpush1.bf16.msra.mxu1 %v3130_v8  ;;  %2654 = vmatprep.subr.bf16.mxu0 %v3089_v30 }
 0x3f5   : > { %2545 = vmatprep.subr.bf16.mxu1 %v3139_v18  ;;  %v2115_v18 = vld [vmem:[#allocation5 + $0x258] sm:$0xff] }
 0x3f6   : > { %v3097_v30 = vcombine.high %v2115_v18, %v2119_v19 }
 0x3f8   : > { %2546 = vmatpush1.bf16.msra.mxu1 %v3138_v20 }
 0x3f9   : > { %2613 = vmatprep.subr.bf16.mxu1 %v3087_v27  ;;  %v3095_v27 = vcombine.high %v2114_v15, %v2118_v17 }
 0x486   : > { %v1898_v40 = vpop.f32.mrb[12].mxu1  ;;  %v1939_v41 = vpop.f32.mrb[12].mxu0 }
 0x487   : > { %v1899_v42 = vadd.f32 %v1898_v40, %v1507_v24  ;;  %v1940_v43 = vadd.f32 %v1939_v41, %v1515_v37  ;;  %v1900_v44 = vpop.f32.mrb[13].mxu1  ;;  %v1941_v45 = vpop.f32.mrb[13].mxu0  ;;  %v2123_v24 = vld [vmem:[#allocation5 + $0x298] sm:$0xff]  ;;  %v3103_v40 = vcombine.high %v2122_v31, %v2126_v34 }
 0x488   : > { %v1901_v46 = vadd.f32 %v1900_v44, %v1511_v38  ;;  %v1942_v47 = vadd.f32 %v1941_v45, %v1519_v39  ;;  %v1902_v48 = vpop.f32.mrb[14].mxu1  ;;  %v1943_v49 = vpop.f32.mrb[14].mxu0  ;;  %v2127_v37 = vld [vmem:[#allocation5 + $0x2b8] sm:$0xff]  ;;  %v3094_v38 = vcombine.low %v2114_v15, %v2118_v17  ;;  %v3096_v39 = vcombine.low %v2115_v18, %v2119_v19 }
 0x489   : > { %2028 = vst [vmem:[%s4055_s22] sm:$0xff] %v1899_v42  ;;  %2030 = vst [vmem:[%s4055_s22 + $0x10] sm:$0xff] %v1940_v43  ;;  %v1903_v50 = vpop.f32.mrb[15].mxu1  ;;  %v1944_v51 = vpop.f32.mrb[15].mxu0  ;;  %v3105_v41 = vcombine.high %v2123_v24, %v2127_v37  ;;  %v2130_v42 = vld [vmem:[#allocation5 + $0x2d0] sm:$0xff]  ;;  %v2131_v44 = vld [vmem:[#allocation5 + $0x2d8] sm:$0xff]  ;;  %v3104_v25 = vcombine.low %v2123_v24, %v2127_v37 }
 0x48a   : > { %2029 = vst [vmem:[%s4055_s22 + $0x8] sm:$0xff] %v1901_v46  ;;  %2031 = vst [vmem:[%s4055_s22 + $0x18] sm:$0xff] %v1942_v47  ;;  %v2134_v43 = vld [vmem:[#allocation5 + $0x2f0] sm:$0xff]  ;;  %v2135_v45 = vld [vmem:[#allocation5 + $0x2f8] sm:$0xff] }
 0x48b   : > { %v3111_v26 = vcombine.high %v2130_v42, %v2134_v43  ;;  %v3113_v52 = vcombine.high %v2131_v44, %v2135_v45  ;;  %v2139_v46 = vld [vmem:[#allocation5 + $0x318] sm:$0xff]  ;;  %v3110_v48 = vcombine.low %v2130_v42, %v2134_v43  ;;  %v3112_v49 = vcombine.low %v2131_v44, %v2135_v45  ;;  %v2146_v51 = vld [vmem:[#allocation5 + $0x350] sm:$0xff] }
 0x48c   : > { %v2143_v47 = vld [vmem:[#allocation5 + $0x338] sm:$0xff] }
 0x4a6   : > { %v1980_v61 = vpop.f32.mrb[16].mxu1  ;;  %v2021_v62 = vpop.f32.mrb[16].mxu0 }
 0x4a7   : > { %v1981_v63 = vadd.f32 %v1980_v61, %v1523_v57  ;;  %v2022_v0 = vadd.f32 %v2021_v62, %v1531_v58  ;;  %v1982_v1 = vpop.f32.mrb[17].mxu1  ;;  %v2023_v2 = vpop.f32.mrb[17].mxu0  ;;  %v2150_v57 = vld [vmem:[#allocation5 + $0x370] sm:$0xff]  ;;  %v2147_v58 = vld [vmem:[#allocation5 + $0x358] sm:$0xff]  ;;  %v3120_v61 = vcombine.low %v2139_v46, %v2143_v47 }
 0x4a8   : > { %v1983_v3 = vadd.f32 %v1982_v1, %v1527_v59  ;;  %v2024_v4 = vadd.f32 %v2023_v2, %v1535_v60  ;;  %v1984_v5 = vpop.f32.mrb[18].mxu1  ;;  %v2025_v6 = vpop.f32.mrb[18].mxu0  ;;  %v2151_v59 = vld [vmem:[#allocation5 + $0x378] sm:$0xff]  ;;  %v3127_v62 = vcombine.high %v2146_v51, %v2150_v57  ;;  %v2158_v1 = vld [vmem:[#allocation5 + $0x3b0] sm:$0xff] }
 0x4a9   : > { %2032 = vst [vmem:[%s4055_s22 + $0x20] sm:$0xff] %v1981_v63  ;;  %2034 = vst [vmem:[%s4055_s22 + $0x30] sm:$0xff] %v2022_v0  ;;  %v1985_v7 = vpop.f32.mrb[19].mxu1  ;;  %v2026_v8 = vpop.f32.mrb[19].mxu0  ;;  %v3129_v63 = vcombine.high %v2147_v58, %v2151_v59  ;;  %v2154_v0 = vld [vmem:[#allocation5 + $0x390] sm:$0xff]  ;;  %v2155_v2 = vld [vmem:[#allocation5 + $0x398] sm:$0xff]  ;;  %v3128_v5 = vcombine.low %v2147_v58, %v2151_v59 }
 0x4aa   : > { %2033 = vst [vmem:[%s4055_s22 + $0x28] sm:$0xff] %v1983_v3  ;;  %2035 = vst [vmem:[%s4055_s22 + $0x38] sm:$0xff] %v2024_v4  ;;  %v2159_v3 = vld [vmem:[#allocation5 + $0x3b8] sm:$0xff]  ;;  %v3126_v4 = vcombine.low %v2146_v51, %v2150_v57  ;;  %v3135_v6 = vcombine.high %v2154_v0, %v2158_v1  ;;  %v2162_v8 = vld [vmem:[#allocation5 + $0x3d0] sm:$0xff] }
 0x4ab   : > { %v3137_v7 = vcombine.high %v2155_v2, %v2159_v3  ;;  %v3136_v15 = vcombine.low %v2155_v2, %v2159_v3 }
 0x4ae   : > { %v2095_v10 = vpop.f32.mrb[20].mxu1 }
 0x4af   : > { %v2096_v12 = vadd.f32 %v3077_v9, %v2095_v10  ;;  %v3302_v14 = vpop.f32.mrb[21].mxu1  ;;  %v2166_v9 = vld [vmem:[#allocation5 + $0x3f0] sm:$0xff]  ;;  %v2163_v10 = vld [vmem:[#allocation5 + $0x3d8] sm:$0xff] }
 0x4b0   : > { %v2098_v16 = vpop.f32.mrb[22].mxu1  ;;  %v3134_v14 = vcombine.low %v2154_v0, %v2158_v1  ;;  %v3142_v18 = vcombine.low %v2162_v8, %v2166_v9 }
 0x4b1   : > { %v2101_v20 = vmax.f32 %v2096_v12, 0.0  ;;  %v3303_v21 = vpop.f32.mrb[23].mxu1  ;;  %v2167_v12 = vld [vmem:[#allocation5 + $0x3f8] sm:$0xff]  ;;  %v3143_v16 = vcombine.high %v2162_v8, %v2166_v9 }
 0x4b2   : > { %v3145_v17 = vcombine.high %v2163_v10, %v2167_v12  ;;  %v3144_v19 = vcombine.low %v2163_v10, %v2167_v12 }
 0x4b3   : > { %v4080_v22 = vpack.c.bf16 %v2101_v20, %v2101_v20 }
 0x4b5   : > { %2564 = vmatmul.mubr.bf16.vlgmr.msra.gmra.mrb[24].mxu1 %v4080_v22  ;;  %2605 = vmatmul.mubr.bf16.vlgmr.msra.gmra.mrb[20].mxu0 %v4080_v22 }
 0x4b6   : > { %2614 = vmatpush1.bf16.msra.mxu1 %v3086_v28  ;;  %2655 = vmatpush1.bf16.msra.mxu0 %v3088_v29  ;;  %v2138_v28 = vld [vmem:[#allocation5 + $0x310] sm:$0xff] }
 0x4b7   : > { %2615 = vmatprep.subr.bf16.mxu1 %v3095_v27  ;;  %2656 = vmatprep.subr.bf16.mxu0 %v3097_v30  ;;  %v2142_v29 = vld [vmem:[#allocation5 + $0x330] sm:$0xff] }
 0x4b8   : > { %2645 = vmatprep.mubr.bf16.mxu1 %v3635_v11  ;;  %2686 = vmatprep.mubr.bf16.mxu0 %v3635_v11  ;;  %v3119_v50 = vcombine.high %v2138_v28, %v2142_v29  ;;  %v3121_v11 = vcombine.high %v2139_v46, %v2143_v47  ;;  %v3118_v60 = vcombine.low %v2138_v28, %v2142_v29 }
 0x4ba   : > { %2616 = vmatpush1.bf16.msra.mxu1 %v3094_v38  ;;  %2657 = vmatpush1.bf16.msra.mxu0 %v3096_v39 }
 0x4bb   : > { %2617 = vmatprep.subr.bf16.mxu1 %v3103_v40  ;;  %2658 = vmatprep.subr.bf16.mxu0 %v3105_v41 }
 0x4be   : > { %2618 = vmatpush1.bf16.msra.mxu1 %v3102_v23  ;;  %2659 = vmatpush1.bf16.msra.mxu0 %v3104_v25 }
 0x4bf   : > { %2619 = vmatprep.subr.bf16.mxu1 %v3111_v26  ;;  %2660 = vmatprep.subr.bf16.mxu0 %v3113_v52 }
 0x4c2   : > { %2620 = vmatpush1.bf16.msra.mxu1 %v3110_v48  ;;  %2661 = vmatpush1.bf16.msra.mxu0 %v3112_v49 }
 0x4c3   : > { %2621 = vmatprep.subr.bf16.mxu1 %v3119_v50  ;;  %2662 = vmatprep.subr.bf16.mxu0 %v3121_v11 }
 0x4c6   : > { %2622 = vmatpush1.bf16.msra.mxu1 %v3118_v60  ;;  %2663 = vmatpush1.bf16.msra.mxu0 %v3120_v61 }
 0x4c7   : > { %2623 = vmatprep.subr.bf16.mxu1 %v3127_v62  ;;  %2664 = vmatprep.subr.bf16.mxu0 %v3129_v63 }
 0x4ca   : > { %2624 = vmatpush1.bf16.msra.mxu1 %v3126_v4  ;;  %2665 = vmatpush1.bf16.msra.mxu0 %v3128_v5 }
 0x4cb   : > { %2625 = vmatprep.subr.bf16.mxu1 %v3135_v6  ;;  %2666 = vmatprep.subr.bf16.mxu0 %v3137_v7 }
 0x4ce   : > { %2626 = vmatpush1.bf16.msra.mxu1 %v3134_v14  ;;  %2667 = vmatpush1.bf16.msra.mxu0 %v3136_v15 }
 0x4cf   : > { %2627 = vmatprep.subr.bf16.mxu1 %v3143_v16  ;;  %2668 = vmatprep.subr.bf16.mxu0 %v3145_v17 }
 0x4d2   : > { %2628 = vmatpush1.bf16.msra.mxu1 %v3142_v18  ;;  %2669 = vmatpush1.bf16.msra.mxu0 %v3144_v19 }
 0x4d5   : > { %2646 = vmatmul.mubr.bf16.vlgmr.msra.gmra.mrb[28].mxu1 %v4080_v22  ;;  %2687 = vmatmul.mubr.bf16.vlgmr.msra.gmra.mrb[24].mxu0 %v4080_v22 }
 0x4d6   : > { %3534 = shalt.err (!%p3531_p9)
}
 0x4d7   : > { %s3535_s25 = scalar_lea.hbm %s4099_s11, 128  ;;  %s3539_s12 = scalar_lea.hbm %s4207_s10, 256 }
 0x4d8   : > { %p3536_p2 = scmp.ne.s32.totalorder %s4099_s11, %s3535_s25  ;;  %p3540_p11 = scmp.lt.u32.totalorder %s4099_s11, %s4207_s10 }
 0x4d9   : > { %p3541_p1 = scmp.lt.u32.totalorder %s3539_s12, %s3535_s25  ;;  %p3543_p6 = scmp.lt.u32.totalorder %s3535_s25, %s4099_s11 }
 0x4da   : > { %p3537_p0 = pnand %p3536_p2, %p3791_p12 }
 0x4db   : > { %p3542_p4 = por %p3541_p1, %p3540_p11 }
 0x4dc   : > { %p3538_p5 = pneg %p3537_p0 }
 0x4dd   : > { %p3544_p8 = por %p3543_p6, %p3542_p4 }
 0x4df   : > { %p3545_p10 = pnand %p3544_p8, %p3538_p5 }
 0x4e1   : > { %3548 = shalt.err (!%p3545_p10)
}
 0x4e2   : > { %3310 = dma.vmem_to_hbm [thread:$0]  (%p3791_p12), %s2724_s30, 128, %s4099_s11, %s2705_s17   ;;  %v3081_v20 = vld [vmem:[%s4206_s9 + $0x8] sm:$0xff] }
 0x4e3   : > { %v2174_v21 = vrot.slane %v3081_v20, %v1506_v13  ;;  %v2182_v22 = vrot.slane %v3081_v20, %v1514_v33  ;;  %v2178_v27 = vrot.slane %v3081_v20, %v1510_v35  ;;  %v2186_v30 = vrot.slane %v3081_v20, %v1518_v36  ;;  %s3164_s30 = sshll.u32 %s3721_s21, 11  ;;  %s2736_s11 = sshll.u32 %s4055_s22, 4  ;;  %s4149_s11 = int_to_ptr.vmem [resolvable:$true] %s2736_s11 }
 0x4e4   : > { %v2190_v36 = vrot.slane %v3081_v20, %v1522_v53  ;;  %v2198_v43 = vrot.slane %v3081_v20, %v1530_v54  ;;  %v2194_v44 = vrot.slane %v3081_v20, %v1526_v55  ;;  %v2202_v45 = vrot.slane %v3081_v20, %v1534_v56  ;;  %s4232_s25 = sld [smem:[#allocation17_spill]]  ;;  %s2710_s21 = scalar_lea.sflag [#allocation9], %s3839_s26 }
 0x4e5   : > { %s3549_s14 = scalar_lea.vmem %s4149_s11, 2048  ;;  %s3637_s12 = smov [#allocation8]  }
 0x4e6   : > { %p3550_p13 = scmp.ne.s32.totalorder %s4149_s11, %s3549_s14  ;;  %s3553_s13 = sshll.u32 %s3637_s12, 4  ;;  %s3554_s13 = int_to_ptr.vmem [resolvable:$false] %s3553_s13 }
 0x4e7   : > { %s3555_s15 = scalar_lea.vmem %s3554_s13, 4096  ;;  %p3556_p9 = scmp.lt.s32.totalorder %s4149_s11, %s3554_s13 }
 0x4e8   : > { %p3551_p3 = pnand %p3550_p13, %p3791_p12  ;;  %p3557_p2 = scmp.lt.s32.totalorder %s3555_s15, %s3549_s14 }
 0x4ea   : > { %s4147_s27 = scalar_lea.hbm %s4232_s25, %s3164_s30  ;;  %p3552_p7 = pneg %p3551_p3 }
 0x4eb   : > { %p3558_p0 = por %p3557_p2, %p3556_p9 }
 0x4ed   : > { %p3559_p5 = pnand %p3558_p0, %p3552_p7 }
 0x588   : > { %v2565_v31 = vpop.f32.mrb[24].mxu1  ;;  %v2606_v34 = vpop.f32.mrb[20].mxu0 }
 0x589   : > { %v2566_v24 = vadd.f32 %v2565_v31, %v2174_v21  ;;  %v2607_v37 = vadd.f32 %v2606_v34, %v2182_v22  ;;  %v2567_v38 = vpop.f32.mrb[25].mxu1  ;;  %v2608_v39 = vpop.f32.mrb[21].mxu0 }
 0x58a   : > { %v2568_v13 = vadd.f32 %v2567_v38, %v2178_v27  ;;  %v2609_v40 = vadd.f32 %v2608_v39, %v2186_v30  ;;  %v2569_v41 = vpop.f32.mrb[26].mxu1  ;;  %v2610_v33 = vpop.f32.mrb[22].mxu0 }
 0x58b   : > { %3146 = vst [vmem:[%s4055_s22 + $0x40] sm:$0xff] %v2566_v24  ;;  %3148 = vst [vmem:[%s4055_s22 + $0x50] sm:$0xff] %v2607_v37  ;;  %v2570_v35 = vpop.f32.mrb[27].mxu1  ;;  %v2611_v42 = vpop.f32.mrb[23].mxu0 }
 0x58c   : > { %3147 = vst [vmem:[%s4055_s22 + $0x48] sm:$0xff] %v2568_v13  ;;  %3149 = vst [vmem:[%s4055_s22 + $0x58] sm:$0xff] %v2609_v40 }
 0x5a8   : > { %v2647_v23 = vpop.f32.mrb[28].mxu1  ;;  %v2688_v25 = vpop.f32.mrb[24].mxu0 }
 0x5a9   : > { %v2648_v26 = vadd.f32 %v2647_v23, %v2190_v36  ;;  %v2689_v53 = vadd.f32 %v2688_v25, %v2198_v43  ;;  %v2649_v52 = vpop.f32.mrb[29].mxu1  ;;  %v2690_v28 = vpop.f32.mrb[25].mxu0 }
 0x5aa   : > { %v2650_v32 = vadd.f32 %v2649_v52, %v2194_v44  ;;  %v2691_v54 = vadd.f32 %v2690_v28, %v2202_v45  ;;  %v2651_v55 = vpop.f32.mrb[30].mxu1  ;;  %v2692_v56 = vpop.f32.mrb[26].mxu0 }
 0x5ab   : > { %3150 = vst [vmem:[%s4055_s22 + $0x60] sm:$0xff] %v2648_v26  ;;  %3152 = vst [vmem:[%s4055_s22 + $0x70] sm:$0xff] %v2689_v53  ;;  %v2652_v29 = vpop.f32.mrb[31].mxu1  ;;  %v2693_v46 = vpop.f32.mrb[27].mxu0 }
 0x5ac   : > { %3151 = vst [vmem:[%s4055_s22 + $0x68] sm:$0xff] %v2650_v32  ;;  %3153 = vst [vmem:[%s4055_s22 + $0x78] sm:$0xff] %v2691_v54 }
 0x5ad   : > { %3562 = shalt.err (!%p3559_p5)
}
 0x5ae   : > { %s3563_s22 = scalar_lea.hbm %s4147_s27, 2048  ;;  %s3567_s30 = scalar_lea.hbm %s4232_s25, 4096 }
 0x5af   : > { %p3564_p11 = scmp.ne.s32.totalorder %s4147_s27, %s3563_s22  ;;  %p3568_p6 = scmp.lt.u32.totalorder %s4147_s27, %s4232_s25 }
 0x5b0   : > { %p3569_p8 = scmp.lt.u32.totalorder %s3567_s30, %s3563_s22  ;;  %p3571_p13 = scmp.lt.u32.totalorder %s3563_s22, %s4147_s27 }
 0x5b1   : > { %p3565_p1 = pnand %p3564_p11, %p3791_p12 }
 0x5b2   : > { %p3570_p10 = por %p3569_p8, %p3568_p6 }
 0x5b3   : > { %p3566_p4 = pneg %p3565_p1 }
 0x5b4   : > { %p3572_p3 = por %p3571_p13, %p3570_p10 }
 0x5b6   : > { %p3573_p7 = pnand %p3572_p3, %p3566_p4 }
 0x5b8   : > { %3576 = shalt.err (!%p3573_p7)
}
 0x5b9   : > { %s3638_s14 = smov 1024   ;;  %s3639_s12 = smov 64  }
 0x5ba   : > { %3311 = dma.vmem_to_hbm [thread:$0]  (%p3791_p12), %s4149_s11, 2048, %s4147_s27, %s2710_s21, %s3638_s14, %s3638_s14, %s3639_s12  }
 0x5bb PF: > { %s4233_s13 = sld [smem:[#allocation14_spill]]  ;;  %s4234_s15 = sld [smem:[#allocation15_spill]] }
 0x5bc   : > { %p4236_p2 = scmp.ge.s32.totalorder %s3623_s20, 2 }
 0x5c1   : > { %s2751_s24 = sand.u32 1, %s4233_s13   ;;  %p4235_p9 = scmp.ne.s32.totalorder %s4234_s15, 0 }
 0x5c2   : > { %s2752_s22 = scalar_lea.sflag [#allocation4], %s2751_s24 }
 0x5c3   : > { %p3323_p0 = pnand %p4236_p2, %p4235_p9 }
 0x5c5   : > { %3602 = dma.done.wait (!%p3323_p0), %s2752_s22, 128  }
 0x5c6   : > { %3604 = vsyncadd (!%p3323_p0), %s2752_s22, 4294967168  ;;  %s2761_s28 = scalar_lea.sflag [#allocation9], %s2751_s24 }
 0x5c7   : > { %3606 = dma.done.wait (!%p3323_p0), %s2761_s28, 2048  }
 0x5c8   : > { %3608 = vsyncadd (!%p3323_p0), %s2761_s28, 4294965248  ;;  %s4237_s20 = sld [smem:[#allocation16_spill]]  ;;  %s4238_s17 = smov %s3615_s18 }
 0x5c9   : > { %s4239_s18 = smov %s3619_s19  ;;  %s4240_s19 = smov %s3787_s29 }
 0x5ce   : > { %p29_p12 = scmp.ge.s32.totalorder %s4237_s20, 4  }
 0x5d0   :  { %31 = sbr.rel (!%p29_p12) target bundleno = 10 (0xa), region = 146 }
 0x5d7   :  { %2766 = vsyncpa [#allocation3], 1 }
 0x5d8   :  { %2768 = vsyncpa [#allocation3 + $0x1], 1 }
 0x5d9   :  { %2769 = vsyncpa [#allocation6], 1 }
 0x5da   :  { %2770 = vsyncpa [#allocation4], 1 }
 0x5db   :  { %2772 = vsyncpa [#allocation4 + $0x1], 1 }
 0x5dc   :  { %2773 = vsyncpa [#allocation9], 1 }
 0x5dd   :  { %2775 = vsyncpa [#allocation9 + $0x1], 1 }

</bundles_post_ra>
